<compile_context>
chip_gen: v6e
topology: v6e:2x2x1
jax: 0.10.0
libtpu: 0.0.40
codegen_flags: <defaults>
</compile_context>

<pallas_src>
import jax
import jax.numpy as jnp
from jax.experimental import pallas as pl
from jax.experimental.pallas import tpu as pltpu


def _round_up(v, m):
    return ((v + m - 1) // m) * m


def _sigmoid(x):
    # exp rides the EUP slot; approx reciprocal (vrcp) keeps the divide off the VALU.
    return pl.reciprocal(1.0 + jnp.exp(-x), approx=True)


def _lstm_kernel(x_ref, w_ih_ref, w_hh_ref, b_ref, out_ref, xp_ref):
    """One batch block.

    x_ref   : (T, Bb, I)     bf16, time-major
    w_ih_ref: (I,  4*Hp)     bf16  (W_ih^T, gate-padded)
    w_hh_ref: (Hp, 4*Hp)     bf16  (W_hh^T, padded)
    b_ref   : (1,  4*Hp)     f32   (b_ih + b_hh, gate-padded)
    out_ref : (Bb, Hp)       f32   (h_T, lane-dense)
    xp_ref  : (T, Bb, 4*Hp)  f32   scratch: time-major hoisted input projection
    """
    T, Bb, Gp = xp_ref.shape
    Hp = Gp // 4
    I = x_ref.shape[-1]

    # ---- Phase 1: h-independent input projection as ONE big MXU matmul over all T*Bb rows ----
    x2d = x_ref[...].reshape(T * Bb, I)                     # layout-trivial leading-dim collapse
    xp = jnp.dot(x2d, w_ih_ref[...], preferred_element_type=jnp.float32) + b_ref[...]
    xp_ref[...] = xp.reshape(T, Bb, Gp)                     # time-major: per-step read is one slab
    # TODO(synk): at production shapes (block_b*T*4Hp f32 beyond ~32 MiB) T-chunk phase 1 with
    # pltpu.emit_pipeline so only a 2x(block_b, T_chunk, 4Hp) xp window is VMEM-resident (v7x).

    # ---- Phase 2: serial recurrence; h/c live in vregs as fori_loop carries ----
    def step(t, carry):
        h_prev, c_prev = carry
        gates = xp_ref[t] + jnp.dot(
            h_prev.astype(w_hh_ref.dtype), w_hh_ref[...],
            preferred_element_type=jnp.float32)
        # TODO(synk): for small-batch latency-bound inference, keep W_hh^T resident in the MXU
        # across timesteps via pltpu.matmul_push_rhs / matmul_acc_lhs / matmul_pop.

        # Hp is a multiple of 128, so every per-gate slice is lane-tile aligned: sigmoid only on
        # the i/f/o column ranges, tanh only on g (no full-width double-activation + select).
        i_g = _sigmoid(gates[:, 0 * Hp:1 * Hp])
        f_g = _sigmoid(gates[:, 1 * Hp:2 * Hp])
        g_g = jnp.tanh(gates[:, 2 * Hp:3 * Hp])
        o_g = _sigmoid(gates[:, 3 * Hp:4 * Hp])
        # TODO(synk): for very large Bb*Hp, additionally chunk the gate dim in 128/256-lane
        # pieces inside the step to bound live vreg ranges (avoid spills on the serial path).

        c_new = f_g * c_prev + i_g * g_g
        h_new = o_g * jnp.tanh(c_new)
        return h_new, c_new

    h0 = jnp.zeros((Bb, Hp), jnp.float32)
    c0 = jnp.zeros((Bb, Hp), jnp.float32)
    unroll = True if T <= 16 else 8                         # bounded unroll for long sequences
    h_T, _ = jax.lax.fori_loop(0, T, step, (h0, c0), unroll=unroll)

    out_ref[...] = h_T.astype(out_ref.dtype)                # lane-dense unmasked store


def lstm_last_hidden(x, w_ih, w_hh, b_ih, b_hh, *, block_b=None):
    """x: (B, T, I) f32; PyTorch-layout weights w_ih (4H, I), w_hh (4H, H), gate order [i,f,g,o].
    Returns h_T == nn.LSTM(batch_first=True)(x)[0][:, -1], shape (B, H)."""
    B, T, I = x.shape
    H = w_hh.shape[1]
    Hp = _round_up(H, 128)          # lane-aligned hidden width (pad columns stay exactly 0)
    Gp = 4 * Hp

    if block_b is None:
        block_b = B
        try:
            # v7x has 2 TensorCores: split the batch into 2 grid blocks (when sublane-legal) so
            # dimension_semantics=("parallel",) can shard them; single-TC chips keep nb=1.
            kind = jax.devices()[0].device_kind.lower()
            if "v7" in kind and B % 2 == 0 and (B // 2) % 8 == 0:
                block_b = B // 2
        except Exception:
            pass
    assert B % block_b == 0, "block_b must divide B"
    assert block_b == B or block_b % 8 == 0, "sub-batch blocks must be sublane (8) aligned"
    nb = B // block_b

    # ---- Pad each gate's H rows to Hp with zeros (keeps padded hidden units identically 0) ----
    def pad_gate_rows(w):                     # (4H, ...) -> (4Hp, ...)
        w4 = w.reshape(4, H, *w.shape[1:])
        pad = [(0, 0), (0, Hp - H)] + [(0, 0)] * (w.ndim - 1)
        return jnp.pad(w4, pad).reshape(4 * Hp, *w.shape[1:])

    w_ih_p = pad_gate_rows(w_ih)                                     # (4Hp, I)
    w_hh_p = jnp.pad(pad_gate_rows(w_hh), ((0, 0), (0, Hp - H)))     # (4Hp, Hp)
    bias_p = pad_gate_rows((b_ih + b_hh).reshape(4 * H, 1)).reshape(1, Gp).astype(jnp.float32)

    # bf16 MXU operands (halves weight DMA/VMEM bytes); f32 accumulation & state.
    x_tm = jnp.transpose(x, (1, 0, 2)).astype(jnp.bfloat16)          # (T, B, I) time-major
    w_ih_t = w_ih_p.T.astype(jnp.bfloat16)                           # (I, 4Hp)
    w_hh_t = w_hh_p.T.astype(jnp.bfloat16)                           # (Hp, 4Hp)

    # Explicit VMEM budget: double-buffered input/output blocks + resident xp scratch + headroom,
    # clamped to v7x's 64 MiB physical (also raises v5e's 16 MiB default scoped limit).
    est = (2 * (T * block_b * I * 2 + I * Gp * 2 + Hp * Gp * 2 + Gp * 4 + block_b * Hp * 4)
           + T * block_b * Gp * 4)
    vmem_limit = int(min(max(2 * est + (8 << 20), 32 << 20), 64 << 20))

    out_p = pl.pallas_call(
        _lstm_kernel,
        out_shape=jax.ShapeDtypeStruct((B, Hp), jnp.float32),
        grid_spec=pltpu.PrefetchScalarGridSpec(
            num_scalar_prefetch=0,
            grid=(nb,),                                    # batch blocks; time loop is in-kernel
            in_specs=[
                pl.BlockSpec((T, block_b, I), lambda b: (0, b, 0)),   # x, time-major block
                pl.BlockSpec((I, Gp), lambda b: (0, 0)),              # W_ih^T (resident)
                pl.BlockSpec((Hp, Gp), lambda b: (0, 0)),             # W_hh^T (resident)
                pl.BlockSpec((1, Gp), lambda b: (0, 0)),              # fused bias
            ],
            out_specs=pl.BlockSpec((block_b, Hp), lambda b: (b, 0)),  # h_T for this batch block
            scratch_shapes=[
                pltpu.VMEM((T, block_b, Gp), jnp.float32),            # time-major xp
                # TODO(synk): optionally store xp in bf16 to halve the largest VMEM consumer.
            ],
        ),
        compiler_params=pltpu.CompilerParams(
            dimension_semantics=("parallel",),             # batch blocks are independent
            vmem_limit_bytes=vmem_limit,
        ),
    )(x_tm, w_ih_t, w_hh_t, bias_p)

    return out_p[:, :H] if Hp != H else out_p


def _lstm_reference(x, w_ih, w_hh, b_ih, b_hh):
    """Pure-JAX f32 reference matching PyTorch nn.LSTM forward, returns out[:, -1]."""
    B, T, I = x.shape
    H = w_hh.shape[1]
    h = jnp.zeros((B, H), jnp.float32)
    c = jnp.zeros((B, H), jnp.float32)

    def step(carry, x_t):
        h, c = carry
        gates = x_t @ w_ih.T + h @ w_hh.T + b_ih + b_hh
        i = jax.nn.sigmoid(gates[:, 0 * H:1 * H])
        f = jax.nn.sigmoid(gates[:, 1 * H:2 * H])
        g = jnp.tanh(gates[:, 2 * H:3 * H])
        o = jax.nn.sigmoid(gates[:, 3 * H:4 * H])
        c = f * c + i * g
        h = o * jnp.tanh(c)
        return (h, c), None

    (h, _), _ = jax.lax.scan(step, (h, c), jnp.transpose(x, (1, 0, 2)))
    return h


if __name__ == "__main__":
    B, T, I, H = 8, 8, 16, 32   # batch, seq, input_size, hidden_size

    key = jax.random.PRNGKey(0)
    kx, k1, k2, k3, k4 = jax.random.split(key, 5)
    bound = 1.0 / jnp.sqrt(H)

    x = jax.random.normal(kx, (B, T, I), dtype=jnp.float32)
    w_ih = jax.random.uniform(k1, (4 * H, I), jnp.float32, -bound, bound)
    w_hh = jax.random.uniform(k2, (4 * H, H), jnp.float32, -bound, bound)
    b_ih = jax.random.uniform(k3, (4 * H,), jnp.float32, -bound, bound)
    b_hh = jax.random.uniform(k4, (4 * H,), jnp.float32, -bound, bound)

    out = lstm_last_hidden(x, w_ih, w_hh, b_ih, b_hh)
    out = jax.block_until_ready(out)

    ref = _lstm_reference(x, w_ih, w_hh, b_ih, b_hh)
    assert out.shape == (B, H)
    # Kernel feeds the MXU bf16 operands and uses approx-reciprocal sigmoid, so compare against
    # the f32 reference with a correspondingly relaxed (but bug-detecting) tolerance.
    max_err = float(jnp.max(jnp.abs(out - ref)))
    assert jnp.allclose(out, ref, atol=3e-2, rtol=3e-2), f"mismatch vs reference (max abs err {max_err})"

    print("KERNEL_OK")
</pallas_src>

<mosaic_0001>
module attributes {stable_mosaic.version = 11 : i64} {
  func.func @_lstm_kernel(%arg0: i32, %arg1: memref<8x8x16xbf16, #tpu.memory_space<vmem>>, %arg2: memref<16x512xbf16, #tpu.memory_space<vmem>>, %arg3: memref<128x512xbf16, #tpu.memory_space<vmem>>, %arg4: memref<1x512xf32, #tpu.memory_space<vmem>>, %arg5: memref<8x128xf32, #tpu.memory_space<vmem>>, %arg6: memref<8x8x512xf32, #tpu.memory_space<vmem>>) attributes {dimension_semantics = [#tpu.dimension_semantics<parallel>], iteration_bounds = array<i64: 1>, scalar_prefetch = 0 : i64, scratch_operands = 1 : i64, tpu.core_type = #tpu.core_type<tc>, window_params = [{transform_indices = @transform_0, window_bounds = array<i64: 8, 8, 16>}, {pipeline_mode = #tpu.pipeline_mode<synchronous>, transform_indices = @transform_1, window_bounds = array<i64: 16, 512>}, {pipeline_mode = #tpu.pipeline_mode<synchronous>, transform_indices = @transform_2, window_bounds = array<i64: 128, 512>}, {pipeline_mode = #tpu.pipeline_mode<synchronous>, transform_indices = @transform_3, window_bounds = array<i64: 1, 512>}, {transform_indices = @transform_4, window_bounds = array<i64: 8, 128>}]} {
    %c0 = arith.constant 0 : index
    %c0_0 = arith.constant 0 : index
    %c0_1 = arith.constant 0 : index
    %0 = vector.load %arg1[%c0, %c0_0, %c0_1] : memref<8x8x16xbf16, #tpu.memory_space<vmem>>, vector<8x8x16xbf16>
    %1 = vector.shape_cast %0 : vector<8x8x16xbf16> to vector<64x16xbf16>
    %c0_2 = arith.constant 0 : index
    %c0_3 = arith.constant 0 : index
    %2 = vector.load %arg2[%c0_2, %c0_3] : memref<16x512xbf16, #tpu.memory_space<vmem>>, vector<16x512xbf16>
    %cst = arith.constant dense<0.000000e+00> : vector<64x512xf32>
    %3 = tpu.matmul %1, %2, %cst {dimension_numbers = #tpu.dot_dimension_numbers<[1], [0], [0], [1], [0, 0, 1, 1], [], []>} : vector<64x16xbf16>, vector<16x512xbf16>, vector<64x512xf32> -> vector<64x512xf32>
    %c0_4 = arith.constant 0 : index
    %c0_5 = arith.constant 0 : index
    %4 = vector.load %arg4[%c0_4, %c0_5] : memref<1x512xf32, #tpu.memory_space<vmem>>, vector<1x512xf32>
    %5 = vector.broadcast %4 : vector<1x512xf32> to vector<64x512xf32>
    %6 = arith.addf %3, %5 : vector<64x512xf32>
    %7 = vector.shape_cast %6 : vector<64x512xf32> to vector<8x8x512xf32>
    %c0_6 = arith.constant 0 : index
    %c0_7 = arith.constant 0 : index
    %c0_8 = arith.constant 0 : index
    %8 = vector.load %arg6[%c0_6, %c0_7, %c0_8] : memref<8x8x512xf32, #tpu.memory_space<vmem>>, vector<8x8x512xf32>
    tpu.vector_store %arg6[%c0_6, %c0_7, %c0_8], %7 {strides = array<i32>} : memref<8x8x512xf32, #tpu.memory_space<vmem>>, vector<8x8x512xf32>,
    %cst_9 = arith.constant 0.000000e+00 : f32
    %9 = vector.broadcast %cst_9 : f32 to vector<8x128xf32>
    %cst_10 = arith.constant 0.000000e+00 : f32
    %10 = vector.broadcast %cst_10 : f32 to vector<8x128xf32>
    %c0_i32 = arith.constant 0 : i32
    %11 = arith.index_cast %c0_i32 : i32 to index
    %c0_11 = arith.constant 0 : index
    %c0_12 = arith.constant 0 : index
    %12 = vector.load %arg6[%11, %c0_11, %c0_12] : memref<8x8x512xf32, #tpu.memory_space<vmem>>, vector<1x8x512xf32>
    %13 = vector.shape_cast %12 : vector<1x8x512xf32> to vector<8x512xf32>
    %14 = arith.truncf %9 : vector<8x128xf32> to vector<8x128xbf16>
    %c0_13 = arith.constant 0 : index
    %c0_14 = arith.constant 0 : index
    %15 = vector.load %arg3[%c0_13, %c0_14] : memref<128x512xbf16, #tpu.memory_space<vmem>>, vector<128x512xbf16>
    %cst_15 = arith.constant dense<0.000000e+00> : vector<8x512xf32>
    %16 = tpu.matmul %14, %15, %cst_15 {dimension_numbers = #tpu.dot_dimension_numbers<[1], [0], [0], [1], [0, 0, 1, 1], [], []>} : vector<8x128xbf16>, vector<128x512xbf16>, vector<8x512xf32> -> vector<8x512xf32>
    %17 = arith.addf %13, %16 : vector<8x512xf32>
    %18 = vector.extract_strided_slice %17 {offsets = [0, 0], sizes = [8, 128], strides = [1, 1]} : vector<8x512xf32> to vector<8x128xf32>
    %cst_16 = arith.constant 0.000000e+00 : f32
    %19 = vector.broadcast %cst_16 : f32 to vector<8x128xf32>
    %20 = arith.subf %19, %18 : vector<8x128xf32>
    %21 = math.exp %20 : vector<8x128xf32>
    %cst_17 = arith.constant 1.000000e+00 : f32
    %22 = vector.broadcast %cst_17 : f32 to vector<8x128xf32>
    %23 = arith.addf %22, %21 : vector<8x128xf32>
    %24 = tpu.reciprocal %23 {approx = true} : vector<8x128xf32> -> vector<8x128xf32>
    %25 = vector.extract_strided_slice %17 {offsets = [0, 128], sizes = [8, 128], strides = [1, 1]} : vector<8x512xf32> to vector<8x128xf32>
    %cst_18 = arith.constant 0.000000e+00 : f32
    %26 = vector.broadcast %cst_18 : f32 to vector<8x128xf32>
    %27 = arith.subf %26, %25 : vector<8x128xf32>
    %28 = math.exp %27 : vector<8x128xf32>
    %cst_19 = arith.constant 1.000000e+00 : f32
    %29 = vector.broadcast %cst_19 : f32 to vector<8x128xf32>
    %30 = arith.addf %29, %28 : vector<8x128xf32>
    %31 = tpu.reciprocal %30 {approx = true} : vector<8x128xf32> -> vector<8x128xf32>
    %32 = vector.extract_strided_slice %17 {offsets = [0, 256], sizes = [8, 128], strides = [1, 1]} : vector<8x512xf32> to vector<8x128xf32>
    %33 = math.tanh %32 : vector<8x128xf32>
    %34 = vector.extract_strided_slice %17 {offsets = [0, 384], sizes = [8, 128], strides = [1, 1]} : vector<8x512xf32> to vector<8x128xf32>
    %cst_20 = arith.constant 0.000000e+00 : f32
    %35 = vector.broadcast %cst_20 : f32 to vector<8x128xf32>
    %36 = arith.subf %35, %34 : vector<8x128xf32>
    %37 = math.exp %36 : vector<8x128xf32>
    %cst_21 = arith.constant 1.000000e+00 : f32
    %38 = vector.broadcast %cst_21 : f32 to vector<8x128xf32>
    %39 = arith.addf %38, %37 : vector<8x128xf32>
    %40 = tpu.reciprocal %39 {approx = true} : vector<8x128xf32> -> vector<8x128xf32>
    %41 = arith.mulf %31, %10 : vector<8x128xf32>
    %42 = arith.mulf %24, %33 : vector<8x128xf32>
    %43 = arith.addf %41, %42 : vector<8x128xf32>
    %44 = math.tanh %43 : vector<8x128xf32>
    %45 = arith.mulf %40, %44 : vector<8x128xf32>
    %c1_i32 = arith.constant 1 : i32
    %46 = arith.index_cast %c1_i32 : i32 to index
    %c0_22 = arith.constant 0 : index
    %c0_23 = arith.constant 0 : index
    %47 = vector.load %arg6[%46, %c0_22, %c0_23] : memref<8x8x512xf32, #tpu.memory_space<vmem>>, vector<1x8x512xf32>
    %48 = vector.shape_cast %47 : vector<1x8x512xf32> to vector<8x512xf32>
    %49 = arith.truncf %45 : vector<8x128xf32> to vector<8x128xbf16>
    %c0_24 = arith.constant 0 : index
    %c0_25 = arith.constant 0 : index
    %50 = vector.load %arg3[%c0_24, %c0_25] : memref<128x512xbf16, #tpu.memory_space<vmem>>, vector<128x512xbf16>
    %cst_26 = arith.constant dense<0.000000e+00> : vector<8x512xf32>
    %51 = tpu.matmul %49, %50, %cst_26 {dimension_numbers = #tpu.dot_dimension_numbers<[1], [0], [0], [1], [0, 0, 1, 1], [], []>} : vector<8x128xbf16>, vector<128x512xbf16>, vector<8x512xf32> -> vector<8x512xf32>
    %52 = arith.addf %48, %51 : vector<8x512xf32>
    %53 = vector.extract_strided_slice %52 {offsets = [0, 0], sizes = [8, 128], strides = [1, 1]} : vector<8x512xf32> to vector<8x128xf32>
    %cst_27 = arith.constant 0.000000e+00 : f32
    %54 = vector.broadcast %cst_27 : f32 to vector<8x128xf32>
    %55 = arith.subf %54, %53 : vector<8x128xf32>
    %56 = math.exp %55 : vector<8x128xf32>
    %cst_28 = arith.constant 1.000000e+00 : f32
    %57 = vector.broadcast %cst_28 : f32 to vector<8x128xf32>
    %58 = arith.addf %57, %56 : vector<8x128xf32>
    %59 = tpu.reciprocal %58 {approx = true} : vector<8x128xf32> -> vector<8x128xf32>
    %60 = vector.extract_strided_slice %52 {offsets = [0, 128], sizes = [8, 128], strides = [1, 1]} : vector<8x512xf32> to vector<8x128xf32>
    %cst_29 = arith.constant 0.000000e+00 : f32
    %61 = vector.broadcast %cst_29 : f32 to vector<8x128xf32>
    %62 = arith.subf %61, %60 : vector<8x128xf32>
    %63 = math.exp %62 : vector<8x128xf32>
    %cst_30 = arith.constant 1.000000e+00 : f32
    %64 = vector.broadcast %cst_30 : f32 to vector<8x128xf32>
    %65 = arith.addf %64, %63 : vector<8x128xf32>
    %66 = tpu.reciprocal %65 {approx = true} : vector<8x128xf32> -> vector<8x128xf32>
    %67 = vector.extract_strided_slice %52 {offsets = [0, 256], sizes = [8, 128], strides = [1, 1]} : vector<8x512xf32> to vector<8x128xf32>
    %68 = math.tanh %67 : vector<8x128xf32>
    %69 = vector.extract_strided_slice %52 {offsets = [0, 384], sizes = [8, 128], strides = [1, 1]} : vector<8x512xf32> to vector<8x128xf32>
    %cst_31 = arith.constant 0.000000e+00 : f32
    %70 = vector.broadcast %cst_31 : f32 to vector<8x128xf32>
    %71 = arith.subf %70, %69 : vector<8x128xf32>
    %72 = math.exp %71 : vector<8x128xf32>
    %cst_32 = arith.constant 1.000000e+00 : f32
    %73 = vector.broadcast %cst_32 : f32 to vector<8x128xf32>
    %74 = arith.addf %73, %72 : vector<8x128xf32>
    %75 = tpu.reciprocal %74 {approx = true} : vector<8x128xf32> -> vector<8x128xf32>
    %76 = arith.mulf %66, %43 : vector<8x128xf32>
    %77 = arith.mulf %59, %68 : vector<8x128xf32>
    %78 = arith.addf %76, %77 : vector<8x128xf32>
    %79 = math.tanh %78 : vector<8x128xf32>
    %80 = arith.mulf %75, %79 : vector<8x128xf32>
    %c2_i32 = arith.constant 2 : i32
    %81 = arith.index_cast %c2_i32 : i32 to index
    %c0_33 = arith.constant 0 : index
    %c0_34 = arith.constant 0 : index
    %82 = vector.load %arg6[%81, %c0_33, %c0_34] : memref<8x8x512xf32, #tpu.memory_space<vmem>>, vector<1x8x512xf32>
    %83 = vector.shape_cast %82 : vector<1x8x512xf32> to vector<8x512xf32>
    %84 = arith.truncf %80 : vector<8x128xf32> to vector<8x128xbf16>
    %c0_35 = arith.constant 0 : index
    %c0_36 = arith.constant 0 : index
    %85 = vector.load %arg3[%c0_35, %c0_36] : memref<128x512xbf16, #tpu.memory_space<vmem>>, vector<128x512xbf16>
    %cst_37 = arith.constant dense<0.000000e+00> : vector<8x512xf32>
    %86 = tpu.matmul %84, %85, %cst_37 {dimension_numbers = #tpu.dot_dimension_numbers<[1], [0], [0], [1], [0, 0, 1, 1], [], []>} : vector<8x128xbf16>, vector<128x512xbf16>, vector<8x512xf32> -> vector<8x512xf32>
    %87 = arith.addf %83, %86 : vector<8x512xf32>
    %88 = vector.extract_strided_slice %87 {offsets = [0, 0], sizes = [8, 128], strides = [1, 1]} : vector<8x512xf32> to vector<8x128xf32>
    %cst_38 = arith.constant 0.000000e+00 : f32
    %89 = vector.broadcast %cst_38 : f32 to vector<8x128xf32>
    %90 = arith.subf %89, %88 : vector<8x128xf32>
    %91 = math.exp %90 : vector<8x128xf32>
    %cst_39 = arith.constant 1.000000e+00 : f32
    %92 = vector.broadcast %cst_39 : f32 to vector<8x128xf32>
    %93 = arith.addf %92, %91 : vector<8x128xf32>
    %94 = tpu.reciprocal %93 {approx = true} : vector<8x128xf32> -> vector<8x128xf32>
    %95 = vector.extract_strided_slice %87 {offsets = [0, 128], sizes = [8, 128], strides = [1, 1]} : vector<8x512xf32> to vector<8x128xf32>
    %cst_40 = arith.constant 0.000000e+00 : f32
    %96 = vector.broadcast %cst_40 : f32 to vector<8x128xf32>
    %97 = arith.subf %96, %95 : vector<8x128xf32>
    %98 = math.exp %97 : vector<8x128xf32>
    %cst_41 = arith.constant 1.000000e+00 : f32
    %99 = vector.broadcast %cst_41 : f32 to vector<8x128xf32>
    %100 = arith.addf %99, %98 : vector<8x128xf32>
    %101 = tpu.reciprocal %100 {approx = true} : vector<8x128xf32> -> vector<8x128xf32>
    %102 = vector.extract_strided_slice %87 {offsets = [0, 256], sizes = [8, 128], strides = [1, 1]} : vector<8x512xf32> to vector<8x128xf32>
    %103 = math.tanh %102 : vector<8x128xf32>
    %104 = vector.extract_strided_slice %87 {offsets = [0, 384], sizes = [8, 128], strides = [1, 1]} : vector<8x512xf32> to vector<8x128xf32>
    %cst_42 = arith.constant 0.000000e+00 : f32
    %105 = vector.broadcast %cst_42 : f32 to vector<8x128xf32>
    %106 = arith.subf %105, %104 : vector<8x128xf32>
    %107 = math.exp %106 : vector<8x128xf32>
    %cst_43 = arith.constant 1.000000e+00 : f32
    %108 = vector.broadcast %cst_43 : f32 to vector<8x128xf32>
    %109 = arith.addf %108, %107 : vector<8x128xf32>
    %110 = tpu.reciprocal %109 {approx = true} : vector<8x128xf32> -> vector<8x128xf32>
    %111 = arith.mulf %101, %78 : vector<8x128xf32>
    %112 = arith.mulf %94, %103 : vector<8x128xf32>
    %113 = arith.addf %111, %112 : vector<8x128xf32>
    %114 = math.tanh %113 : vector<8x128xf32>
    %115 = arith.mulf %110, %114 : vector<8x128xf32>
    %c3_i32 = arith.constant 3 : i32
    %116 = arith.index_cast %c3_i32 : i32 to index
    %c0_44 = arith.constant 0 : index
    %c0_45 = arith.constant 0 : index
    %117 = vector.load %arg6[%116, %c0_44, %c0_45] : memref<8x8x512xf32, #tpu.memory_space<vmem>>, vector<1x8x512xf32>
    %118 = vector.shape_cast %117 : vector<1x8x512xf32> to vector<8x512xf32>
    %119 = arith.truncf %115 : vector<8x128xf32> to vector<8x128xbf16>
    %c0_46 = arith.constant 0 : index
    %c0_47 = arith.constant 0 : index
    %120 = vector.load %arg3[%c0_46, %c0_47] : memref<128x512xbf16, #tpu.memory_space<vmem>>, vector<128x512xbf16>
    %cst_48 = arith.constant dense<0.000000e+00> : vector<8x512xf32>
    %121 = tpu.matmul %119, %120, %cst_48 {dimension_numbers = #tpu.dot_dimension_numbers<[1], [0], [0], [1], [0, 0, 1, 1], [], []>} : vector<8x128xbf16>, vector<128x512xbf16>, vector<8x512xf32> -> vector<8x512xf32>
    %122 = arith.addf %118, %121 : vector<8x512xf32>
    %123 = vector.extract_strided_slice %122 {offsets = [0, 0], sizes = [8, 128], strides = [1, 1]} : vector<8x512xf32> to vector<8x128xf32>
    %cst_49 = arith.constant 0.000000e+00 : f32
    %124 = vector.broadcast %cst_49 : f32 to vector<8x128xf32>
    %125 = arith.subf %124, %123 : vector<8x128xf32>
    %126 = math.exp %125 : vector<8x128xf32>
    %cst_50 = arith.constant 1.000000e+00 : f32
    %127 = vector.broadcast %cst_50 : f32 to vector<8x128xf32>
    %128 = arith.addf %127, %126 : vector<8x128xf32>
    %129 = tpu.reciprocal %128 {approx = true} : vector<8x128xf32> -> vector<8x128xf32>
    %130 = vector.extract_strided_slice %122 {offsets = [0, 128], sizes = [8, 128], strides = [1, 1]} : vector<8x512xf32> to vector<8x128xf32>
    %cst_51 = arith.constant 0.000000e+00 : f32
    %131 = vector.broadcast %cst_51 : f32 to vector<8x128xf32>
    %132 = arith.subf %131, %130 : vector<8x128xf32>
    %133 = math.exp %132 : vector<8x128xf32>
    %cst_52 = arith.constant 1.000000e+00 : f32
    %134 = vector.broadcast %cst_52 : f32 to vector<8x128xf32>
    %135 = arith.addf %134, %133 : vector<8x128xf32>
    %136 = tpu.reciprocal %135 {approx = true} : vector<8x128xf32> -> vector<8x128xf32>
    %137 = vector.extract_strided_slice %122 {offsets = [0, 256], sizes = [8, 128], strides = [1, 1]} : vector<8x512xf32> to vector<8x128xf32>
    %138 = math.tanh %137 : vector<8x128xf32>
    %139 = vector.extract_strided_slice %122 {offsets = [0, 384], sizes = [8, 128], strides = [1, 1]} : vector<8x512xf32> to vector<8x128xf32>
    %cst_53 = arith.constant 0.000000e+00 : f32
    %140 = vector.broadcast %cst_53 : f32 to vector<8x128xf32>
    %141 = arith.subf %140, %139 : vector<8x128xf32>
    %142 = math.exp %141 : vector<8x128xf32>
    %cst_54 = arith.constant 1.000000e+00 : f32
    %143 = vector.broadcast %cst_54 : f32 to vector<8x128xf32>
    %144 = arith.addf %143, %142 : vector<8x128xf32>
    %145 = tpu.reciprocal %144 {approx = true} : vector<8x128xf32> -> vector<8x128xf32>
    %146 = arith.mulf %136, %113 : vector<8x128xf32>
    %147 = arith.mulf %129, %138 : vector<8x128xf32>
    %148 = arith.addf %146, %147 : vector<8x128xf32>
    %149 = math.tanh %148 : vector<8x128xf32>
    %150 = arith.mulf %145, %149 : vector<8x128xf32>
    %c4_i32 = arith.constant 4 : i32
    %151 = arith.index_cast %c4_i32 : i32 to index
    %c0_55 = arith.constant 0 : index
    %c0_56 = arith.constant 0 : index
    %152 = vector.load %arg6[%151, %c0_55, %c0_56] : memref<8x8x512xf32, #tpu.memory_space<vmem>>, vector<1x8x512xf32>
    %153 = vector.shape_cast %152 : vector<1x8x512xf32> to vector<8x512xf32>
    %154 = arith.truncf %150 : vector<8x128xf32> to vector<8x128xbf16>
    %c0_57 = arith.constant 0 : index
    %c0_58 = arith.constant 0 : index
    %155 = vector.load %arg3[%c0_57, %c0_58] : memref<128x512xbf16, #tpu.memory_space<vmem>>, vector<128x512xbf16>
    %cst_59 = arith.constant dense<0.000000e+00> : vector<8x512xf32>
    %156 = tpu.matmul %154, %155, %cst_59 {dimension_numbers = #tpu.dot_dimension_numbers<[1], [0], [0], [1], [0, 0, 1, 1], [], []>} : vector<8x128xbf16>, vector<128x512xbf16>, vector<8x512xf32> -> vector<8x512xf32>
    %157 = arith.addf %153, %156 : vector<8x512xf32>
    %158 = vector.extract_strided_slice %157 {offsets = [0, 0], sizes = [8, 128], strides = [1, 1]} : vector<8x512xf32> to vector<8x128xf32>
    %cst_60 = arith.constant 0.000000e+00 : f32
    %159 = vector.broadcast %cst_60 : f32 to vector<8x128xf32>
    %160 = arith.subf %159, %158 : vector<8x128xf32>
    %161 = math.exp %160 : vector<8x128xf32>
    %cst_61 = arith.constant 1.000000e+00 : f32
    %162 = vector.broadcast %cst_61 : f32 to vector<8x128xf32>
    %163 = arith.addf %162, %161 : vector<8x128xf32>
    %164 = tpu.reciprocal %163 {approx = true} : vector<8x128xf32> -> vector<8x128xf32>
    %165 = vector.extract_strided_slice %157 {offsets = [0, 128], sizes = [8, 128], strides = [1, 1]} : vector<8x512xf32> to vector<8x128xf32>
    %cst_62 = arith.constant 0.000000e+00 : f32
    %166 = vector.broadcast %cst_62 : f32 to vector<8x128xf32>
    %167 = arith.subf %166, %165 : vector<8x128xf32>
    %168 = math.exp %167 : vector<8x128xf32>
    %cst_63 = arith.constant 1.000000e+00 : f32
    %169 = vector.broadcast %cst_63 : f32 to vector<8x128xf32>
    %170 = arith.addf %169, %168 : vector<8x128xf32>
    %171 = tpu.reciprocal %170 {approx = true} : vector<8x128xf32> -> vector<8x128xf32>
    %172 = vector.extract_strided_slice %157 {offsets = [0, 256], sizes = [8, 128], strides = [1, 1]} : vector<8x512xf32> to vector<8x128xf32>
    %173 = math.tanh %172 : vector<8x128xf32>
    %174 = vector.extract_strided_slice %157 {offsets = [0, 384], sizes = [8, 128], strides = [1, 1]} : vector<8x512xf32> to vector<8x128xf32>
    %cst_64 = arith.constant 0.000000e+00 : f32
    %175 = vector.broadcast %cst_64 : f32 to vector<8x128xf32>
    %176 = arith.subf %175, %174 : vector<8x128xf32>
    %177 = math.exp %176 : vector<8x128xf32>
    %cst_65 = arith.constant 1.000000e+00 : f32
    %178 = vector.broadcast %cst_65 : f32 to vector<8x128xf32>
    %179 = arith.addf %178, %177 : vector<8x128xf32>
    %180 = tpu.reciprocal %179 {approx = true} : vector<8x128xf32> -> vector<8x128xf32>
    %181 = arith.mulf %171, %148 : vector<8x128xf32>
    %182 = arith.mulf %164, %173 : vector<8x128xf32>
    %183 = arith.addf %181, %182 : vector<8x128xf32>
    %184 = math.tanh %183 : vector<8x128xf32>
    %185 = arith.mulf %180, %184 : vector<8x128xf32>
    %c5_i32 = arith.constant 5 : i32
    %186 = arith.index_cast %c5_i32 : i32 to index
    %c0_66 = arith.constant 0 : index
    %c0_67 = arith.constant 0 : index
    %187 = vector.load %arg6[%186, %c0_66, %c0_67] : memref<8x8x512xf32, #tpu.memory_space<vmem>>, vector<1x8x512xf32>
    %188 = vector.shape_cast %187 : vector<1x8x512xf32> to vector<8x512xf32>
    %189 = arith.truncf %185 : vector<8x128xf32> to vector<8x128xbf16>
    %c0_68 = arith.constant 0 : index
    %c0_69 = arith.constant 0 : index
    %190 = vector.load %arg3[%c0_68, %c0_69] : memref<128x512xbf16, #tpu.memory_space<vmem>>, vector<128x512xbf16>
    %cst_70 = arith.constant dense<0.000000e+00> : vector<8x512xf32>
    %191 = tpu.matmul %189, %190, %cst_70 {dimension_numbers = #tpu.dot_dimension_numbers<[1], [0], [0], [1], [0, 0, 1, 1], [], []>} : vector<8x128xbf16>, vector<128x512xbf16>, vector<8x512xf32> -> vector<8x512xf32>
    %192 = arith.addf %188, %191 : vector<8x512xf32>
    %193 = vector.extract_strided_slice %192 {offsets = [0, 0], sizes = [8, 128], strides = [1, 1]} : vector<8x512xf32> to vector<8x128xf32>
    %cst_71 = arith.constant 0.000000e+00 : f32
    %194 = vector.broadcast %cst_71 : f32 to vector<8x128xf32>
    %195 = arith.subf %194, %193 : vector<8x128xf32>
    %196 = math.exp %195 : vector<8x128xf32>
    %cst_72 = arith.constant 1.000000e+00 : f32
    %197 = vector.broadcast %cst_72 : f32 to vector<8x128xf32>
    %198 = arith.addf %197, %196 : vector<8x128xf32>
    %199 = tpu.reciprocal %198 {approx = true} : vector<8x128xf32> -> vector<8x128xf32>
    %200 = vector.extract_strided_slice %192 {offsets = [0, 128], sizes = [8, 128], strides = [1, 1]} : vector<8x512xf32> to vector<8x128xf32>
    %cst_73 = arith.constant 0.000000e+00 : f32
    %201 = vector.broadcast %cst_73 : f32 to vector<8x128xf32>
    %202 = arith.subf %201, %200 : vector<8x128xf32>
    %203 = math.exp %202 : vector<8x128xf32>
    %cst_74 = arith.constant 1.000000e+00 : f32
    %204 = vector.broadcast %cst_74 : f32 to vector<8x128xf32>
    %205 = arith.addf %204, %203 : vector<8x128xf32>
    %206 = tpu.reciprocal %205 {approx = true} : vector<8x128xf32> -> vector<8x128xf32>
    %207 = vector.extract_strided_slice %192 {offsets = [0, 256], sizes = [8, 128], strides = [1, 1]} : vector<8x512xf32> to vector<8x128xf32>
    %208 = math.tanh %207 : vector<8x128xf32>
    %209 = vector.extract_strided_slice %192 {offsets = [0, 384], sizes = [8, 128], strides = [1, 1]} : vector<8x512xf32> to vector<8x128xf32>
    %cst_75 = arith.constant 0.000000e+00 : f32
    %210 = vector.broadcast %cst_75 : f32 to vector<8x128xf32>
    %211 = arith.subf %210, %209 : vector<8x128xf32>
    %212 = math.exp %211 : vector<8x128xf32>
    %cst_76 = arith.constant 1.000000e+00 : f32
    %213 = vector.broadcast %cst_76 : f32 to vector<8x128xf32>
    %214 = arith.addf %213, %212 : vector<8x128xf32>
    %215 = tpu.reciprocal %214 {approx = true} : vector<8x128xf32> -> vector<8x128xf32>
    %216 = arith.mulf %206, %183 : vector<8x128xf32>
    %217 = arith.mulf %199, %208 : vector<8x128xf32>
    %218 = arith.addf %216, %217 : vector<8x128xf32>
    %219 = math.tanh %218 : vector<8x128xf32>
    %220 = arith.mulf %215, %219 : vector<8x128xf32>
    %c6_i32 = arith.constant 6 : i32
    %221 = arith.index_cast %c6_i32 : i32 to index
    %c0_77 = arith.constant 0 : index
    %c0_78 = arith.constant 0 : index
    %222 = vector.load %arg6[%221, %c0_77, %c0_78] : memref<8x8x512xf32, #tpu.memory_space<vmem>>, vector<1x8x512xf32>
    %223 = vector.shape_cast %222 : vector<1x8x512xf32> to vector<8x512xf32>
    %224 = arith.truncf %220 : vector<8x128xf32> to vector<8x128xbf16>
    %c0_79 = arith.constant 0 : index
    %c0_80 = arith.constant 0 : index
    %225 = vector.load %arg3[%c0_79, %c0_80] : memref<128x512xbf16, #tpu.memory_space<vmem>>, vector<128x512xbf16>
    %cst_81 = arith.constant dense<0.000000e+00> : vector<8x512xf32>
    %226 = tpu.matmul %224, %225, %cst_81 {dimension_numbers = #tpu.dot_dimension_numbers<[1], [0], [0], [1], [0, 0, 1, 1], [], []>} : vector<8x128xbf16>, vector<128x512xbf16>, vector<8x512xf32> -> vector<8x512xf32>
    %227 = arith.addf %223, %226 : vector<8x512xf32>
    %228 = vector.extract_strided_slice %227 {offsets = [0, 0], sizes = [8, 128], strides = [1, 1]} : vector<8x512xf32> to vector<8x128xf32>
    %cst_82 = arith.constant 0.000000e+00 : f32
    %229 = vector.broadcast %cst_82 : f32 to vector<8x128xf32>
    %230 = arith.subf %229, %228 : vector<8x128xf32>
    %231 = math.exp %230 : vector<8x128xf32>
    %cst_83 = arith.constant 1.000000e+00 : f32
    %232 = vector.broadcast %cst_83 : f32 to vector<8x128xf32>
    %233 = arith.addf %232, %231 : vector<8x128xf32>
    %234 = tpu.reciprocal %233 {approx = true} : vector<8x128xf32> -> vector<8x128xf32>
    %235 = vector.extract_strided_slice %227 {offsets = [0, 128], sizes = [8, 128], strides = [1, 1]} : vector<8x512xf32> to vector<8x128xf32>
    %cst_84 = arith.constant 0.000000e+00 : f32
    %236 = vector.broadcast %cst_84 : f32 to vector<8x128xf32>
    %237 = arith.subf %236, %235 : vector<8x128xf32>
    %238 = math.exp %237 : vector<8x128xf32>
    %cst_85 = arith.constant 1.000000e+00 : f32
    %239 = vector.broadcast %cst_85 : f32 to vector<8x128xf32>
    %240 = arith.addf %239, %238 : vector<8x128xf32>
    %241 = tpu.reciprocal %240 {approx = true} : vector<8x128xf32> -> vector<8x128xf32>
    %242 = vector.extract_strided_slice %227 {offsets = [0, 256], sizes = [8, 128], strides = [1, 1]} : vector<8x512xf32> to vector<8x128xf32>
    %243 = math.tanh %242 : vector<8x128xf32>
    %244 = vector.extract_strided_slice %227 {offsets = [0, 384], sizes = [8, 128], strides = [1, 1]} : vector<8x512xf32> to vector<8x128xf32>
    %cst_86 = arith.constant 0.000000e+00 : f32
    %245 = vector.broadcast %cst_86 : f32 to vector<8x128xf32>
    %246 = arith.subf %245, %244 : vector<8x128xf32>
    %247 = math.exp %246 : vector<8x128xf32>
    %cst_87 = arith.constant 1.000000e+00 : f32
    %248 = vector.broadcast %cst_87 : f32 to vector<8x128xf32>
    %249 = arith.addf %248, %247 : vector<8x128xf32>
    %250 = tpu.reciprocal %249 {approx = true} : vector<8x128xf32> -> vector<8x128xf32>
    %251 = arith.mulf %241, %218 : vector<8x128xf32>
    %252 = arith.mulf %234, %243 : vector<8x128xf32>
    %253 = arith.addf %251, %252 : vector<8x128xf32>
    %254 = math.tanh %253 : vector<8x128xf32>
    %255 = arith.mulf %250, %254 : vector<8x128xf32>
    %c7_i32 = arith.constant 7 : i32
    %256 = arith.index_cast %c7_i32 : i32 to index
    %c0_88 = arith.constant 0 : index
    %c0_89 = arith.constant 0 : index
    %257 = vector.load %arg6[%256, %c0_88, %c0_89] : memref<8x8x512xf32, #tpu.memory_space<vmem>>, vector<1x8x512xf32>
    %258 = vector.shape_cast %257 : vector<1x8x512xf32> to vector<8x512xf32>
    %259 = arith.truncf %255 : vector<8x128xf32> to vector<8x128xbf16>
    %c0_90 = arith.constant 0 : index
    %c0_91 = arith.constant 0 : index
    %260 = vector.load %arg3[%c0_90, %c0_91] : memref<128x512xbf16, #tpu.memory_space<vmem>>, vector<128x512xbf16>
    %cst_92 = arith.constant dense<0.000000e+00> : vector<8x512xf32>
    %261 = tpu.matmul %259, %260, %cst_92 {dimension_numbers = #tpu.dot_dimension_numbers<[1], [0], [0], [1], [0, 0, 1, 1], [], []>} : vector<8x128xbf16>, vector<128x512xbf16>, vector<8x512xf32> -> vector<8x512xf32>
    %262 = arith.addf %258, %261 : vector<8x512xf32>
    %263 = vector.extract_strided_slice %262 {offsets = [0, 0], sizes = [8, 128], strides = [1, 1]} : vector<8x512xf32> to vector<8x128xf32>
    %cst_93 = arith.constant 0.000000e+00 : f32
    %264 = vector.broadcast %cst_93 : f32 to vector<8x128xf32>
    %265 = arith.subf %264, %263 : vector<8x128xf32>
    %266 = math.exp %265 : vector<8x128xf32>
    %cst_94 = arith.constant 1.000000e+00 : f32
    %267 = vector.broadcast %cst_94 : f32 to vector<8x128xf32>
    %268 = arith.addf %267, %266 : vector<8x128xf32>
    %269 = tpu.reciprocal %268 {approx = true} : vector<8x128xf32> -> vector<8x128xf32>
    %270 = vector.extract_strided_slice %262 {offsets = [0, 128], sizes = [8, 128], strides = [1, 1]} : vector<8x512xf32> to vector<8x128xf32>
    %cst_95 = arith.constant 0.000000e+00 : f32
    %271 = vector.broadcast %cst_95 : f32 to vector<8x128xf32>
    %272 = arith.subf %271, %270 : vector<8x128xf32>
    %273 = math.exp %272 : vector<8x128xf32>
    %cst_96 = arith.constant 1.000000e+00 : f32
    %274 = vector.broadcast %cst_96 : f32 to vector<8x128xf32>
    %275 = arith.addf %274, %273 : vector<8x128xf32>
    %276 = tpu.reciprocal %275 {approx = true} : vector<8x128xf32> -> vector<8x128xf32>
    %277 = vector.extract_strided_slice %262 {offsets = [0, 256], sizes = [8, 128], strides = [1, 1]} : vector<8x512xf32> to vector<8x128xf32>
    %278 = math.tanh %277 : vector<8x128xf32>
    %279 = vector.extract_strided_slice %262 {offsets = [0, 384], sizes = [8, 128], strides = [1, 1]} : vector<8x512xf32> to vector<8x128xf32>
    %cst_97 = arith.constant 0.000000e+00 : f32
    %280 = vector.broadcast %cst_97 : f32 to vector<8x128xf32>
    %281 = arith.subf %280, %279 : vector<8x128xf32>
    %282 = math.exp %281 : vector<8x128xf32>
    %cst_98 = arith.constant 1.000000e+00 : f32
    %283 = vector.broadcast %cst_98 : f32 to vector<8x128xf32>
    %284 = arith.addf %283, %282 : vector<8x128xf32>
    %285 = tpu.reciprocal %284 {approx = true} : vector<8x128xf32> -> vector<8x128xf32>
    %286 = arith.mulf %276, %253 : vector<8x128xf32>
    %287 = arith.mulf %269, %278 : vector<8x128xf32>
    %288 = arith.addf %286, %287 : vector<8x128xf32>
    %289 = math.tanh %288 : vector<8x128xf32>
    %290 = arith.mulf %285, %289 : vector<8x128xf32>
    %c8_i32 = arith.constant 8 : i32
    %c0_99 = arith.constant 0 : index
    %c0_100 = arith.constant 0 : index
    %291 = vector.load %arg5[%c0_99, %c0_100] : memref<8x128xf32, #tpu.memory_space<vmem>>, vector<8x128xf32>
    tpu.vector_store %arg5[%c0_99, %c0_100], %290 {strides = array<i32>} : memref<8x128xf32, #tpu.memory_space<vmem>>, vector<8x128xf32>,
    return
  }
  func.func @transform_0(%arg0: i32) -> (i32, i32, i32) {
    %c0_i32 = arith.constant 0 : i32
    %c0_i32_0 = arith.constant 0 : i32
    %c0_i32_1 = arith.constant 0 : i32
    return %c0_i32, %arg0, %c0_i32_0 : i32, i32, i32
  }
  func.func @transform_1(%arg0: i32) -> (i32, i32) {
    %c0_i32 = arith.constant 0 : i32
    %c0_i32_0 = arith.constant 0 : i32
    %c0_i32_1 = arith.constant 0 : i32
    return %c0_i32, %c0_i32_0 : i32, i32
  }
  func.func @transform_2(%arg0: i32) -> (i32, i32) {
    %c0_i32 = arith.constant 0 : i32
    %c0_i32_0 = arith.constant 0 : i32
    %c0_i32_1 = arith.constant 0 : i32
    return %c0_i32, %c0_i32_0 : i32, i32
  }
  func.func @transform_3(%arg0: i32) -> (i32, i32) {
    %c0_i32 = arith.constant 0 : i32
    %c0_i32_0 = arith.constant 0 : i32
    %c0_i32_1 = arith.constant 0 : i32
    return %c0_i32, %c0_i32_0 : i32, i32
  }
  func.func @transform_4(%arg0: i32) -> (i32, i32) {
    %c0_i32 = arith.constant 0 : i32
    %c0_i32_0 = arith.constant 0 : i32
    return %arg0, %c0_i32 : i32, i32
  }
}

</mosaic_0001>

<bundles_post_ra>
// kernel: tpu_custom_call.1
= control target key start
LH: loop header
LB: loop body
LE: loop exit
PB: predicated region body
PF: predicated region fallthrough
CT: control target
= control target key end

     0   :  { %9 = vsyncpa [#allocation4], 0  ;;  %s2395_s0 = inlined_call_operand.hbm [shape: bf16[8,8,16], index: 0, kind: input, shape index: {}]   ;;  %s2396_s1 = inlined_call_operand.hbm [shape: bf16[16,512], index: 1, kind: input, shape index: {}]   ;;  %s2397_s2 = inlined_call_operand.hbm [shape: bf16[128,512], index: 2, kind: input, shape index: {}]   ;;  %s2398_s3 = inlined_call_operand.vmem [shape: f32[1,512], index: 3, kind: input, shape index: {}]   ;;  %s2399_s4 = inlined_call_operand.hbm [shape: f32[8,128], index: 4, kind: output, shape index: {}]  }
   0x1   :  { %10 = vsyncpa [#allocation7], 0 }
   0x2   :  { %11 = vsyncpa [#allocation5], 0  ;;  %s1797_s15 = smov [#allocation6]  }
   0x3   :  { %s29_s16 = sshll.u32 %s1797_s15, 4  ;;  %s30_s16 = int_to_ptr.vmem [resolvable:$true] %s29_s16 }
   0x4   :  { %s1719_s17 = scalar_lea.vmem %s30_s16, 512  ;;  %p1724_p1 = scmp.lt.s32.totalorder %s30_s16, %s30_s16 }
   0x5   :  { %p1720_p0 = scmp.ne.s32.totalorder %s30_s16, %s1719_s17  ;;  %p1725_p2 = scmp.lt.s32.totalorder %s1719_s17, %s1719_s17 }
   0x7   :  { %p1726_p3 = por %p1725_p2, %p1724_p1 }
   0x9   :  { %p1727_p4 = pnand %p1726_p3, %p1720_p0 }
   0xb   :  { %1730 = shalt.err (!%p1727_p4)
}
   0xc   :  { %s1798_s18 = smov 256   ;;  %s1799_s19 = smov 16  }
   0xd   :  { %35 = dma.hbm_to_vmem [thread:$0]  %s2396_s1, 512, %s30_s16, [#allocation7], %s1798_s18, %s1798_s18, %s1799_s19  }
   0xe   :  { %s1800_s22 = smov [#allocation3]  }
   0xf   :  { %s17_s23 = sshll.u32 %s1800_s22, 4  ;;  %s18_s23 = int_to_ptr.vmem [resolvable:$true] %s17_s23 }
  0x10   :  { %s1739_s24 = scalar_lea.vmem %s18_s23, 512  ;;  %p1744_p6 = scmp.lt.s32.totalorder %s18_s23, %s18_s23 }
  0x11   :  { %p1740_p5 = scmp.ne.s32.totalorder %s18_s23, %s1739_s24  ;;  %p1745_p7 = scmp.lt.s32.totalorder %s1739_s24, %s1739_s24 }
  0x13   :  { %p1746_p8 = por %p1745_p7, %p1744_p6 }
  0x15   :  { %p1747_p9 = pnand %p1746_p8, %p1740_p5 }
  0x17   :  { %1750 = shalt.err (!%p1747_p9)
}
  0x18   :  { %s1801_s25 = smov 64   ;;  %s1802_s26 = smov 4  }
  0x19   :  { %23 = dma.hbm_to_vmem [thread:$0]  %s2395_s0, 512, %s18_s23, [#allocation4], %s1801_s25, %s1801_s25, %s1802_s26  }
  0x1a   :  { %s1803_s29 = smov [#allocation8]  }
  0x1b   :  { %s41_s30 = sshll.u32 %s1803_s29, 4  ;;  %s42_s30 = int_to_ptr.vmem [resolvable:$true] %s41_s30 }
  0x1c   :  { %s1759_s1 = scalar_lea.vmem %s42_s30, 4096  ;;  %p1764_p11 = scmp.lt.s32.totalorder %s42_s30, %s42_s30 }
  0x1d   :  { %p1760_p10 = scmp.ne.s32.totalorder %s42_s30, %s1759_s1  ;;  %p1765_p12 = scmp.lt.s32.totalorder %s1759_s1, %s1759_s1 }
  0x1f   :  { %p1766_p13 = por %p1765_p12, %p1764_p11 }
  0x21   :  { %p1767_p0 = pnand %p1766_p13, %p1760_p10 }
  0x23   :  { %1770 = shalt.err (!%p1767_p0)
}
  0x24   :  { %47 = dma.hbm_to_vmem [thread:$0]  %s2397_s2, 4096, %s42_s30, [#allocation7], %s1798_s18, %s1798_s18, %s1799_s19  }
  0x25   :  { %1791 = dma.done.wait [#allocation4], 512  }
  0x26   :  { %1792 = vsyncadd [#allocation4], 4294966784 }
  0x27   :  { %1793 = dma.done.wait [#allocation7], 4608  }
  0x28   :  { %1794 = vsyncadd [#allocation7], 4294962688  ;;  %v2400_v0 = vmov 0   ;;  %v1493_v1 = vld [vmem:[#allocation6 + $0x4] ss:$16 sps:$4 sm:$0xff]   ;;  %vm134_vm0 = vcmask 130048   ;;  %v74_v41 = vlaneseq }
  0x29   :  { %179 = vmatprep.mubr.bf16.mxu0 %v2400_v0  ;;  %252 = vmatprep.mubr.bf16.mxu1 %v2400_v0  ;;  %v1495_v2 = vld [vmem:[#allocation6 + $0xc] ss:$16 sps:$4 sm:$0xff]   ;;  %v1497_v3 = vld [vmem:[#allocation6] ss:$16 sps:$4 sm:$0xff]   ;;  %v1498_v4 = vld [vmem:[#allocation6 + $0x8] ss:$16 sps:$4 sm:$0xff]  }
  0x2a   :  { %161 = vmatprep.subr.bf16.mxu0 %v1493_v1  ;;  %234 = vmatprep.subr.bf16.mxu1 %v1495_v2  ;;  %v1499_v5 = vld [vmem:[#allocation3] sm:$0xff]   ;;  %v1844_v7 = vld [vmem:[#allocation8 + $0xec] ss:$16 sps:$4 sm:$0xff]   ;;  %v1849_v9 = vld [vmem:[#allocation8 + $0xe8] ss:$16 sps:$4 sm:$0xff]   ;;  %v75_v42 = vshrl.u32 %v74_v41, 7 }
  0x2b   :  { %162 = vmatpush1.bf16.msra.mxu0 %v1497_v3  ;;  %235 = vmatpush1.bf16.msra.mxu1 %v1498_v4  ;;  %v1842_v6 = vld [vmem:[#allocation8 + $0xe4] ss:$16 sps:$4 sm:$0xff]   ;;  %v1846_v8 = vld [vmem:[#allocation8 + $0xe0] ss:$16 sps:$4 sm:$0xff]   ;;  %v1857_v11 = vld [vmem:[#allocation8 + $0xcc] ss:$16 sps:$4 sm:$0xff]  }
  0x2c   :  { %521 = vmatprep.subr.bf16.mxu0 %v1842_v6  ;;  %v1853_v10 = vld [vmem:[#allocation8 + $0xc4] ss:$16 sps:$4 sm:$0xff]   ;;  %562 = vmatprep.subr.bf16.mxu1 %v1844_v7  ;;  %v1859_v12 = vld [vmem:[#allocation8 + $0xc0] ss:$16 sps:$4 sm:$0xff]   ;;  %v1861_v13 = vld [vmem:[#allocation8 + $0xc8] ss:$16 sps:$4 sm:$0xff]  }
  0x2d   :  { %v1512_v14 = vld [vmem:[#allocation3 + $0x8] sm:$0xff]   ;;  %v1867_v15 = vld [vmem:[#allocation8 + $0xa4] ss:$16 sps:$4 sm:$0xff]   ;;  %v1873_v17 = vld [vmem:[#allocation8 + $0xa0] ss:$16 sps:$4 sm:$0xff]   ;;  %v84_v43 = vsub.s32 2, %v75_v42 }
  0x2e   :  { %1444 = vmatmul.mubr.msk.bf16.vlgmr.msra.gmra.mxu0 %vm134_vm0, %v1499_v5  ;;  %1448 = vmatmul.mubr.msk.bf16.vlgmr.msra.gmra.mxu1 %vm134_vm0, %v1499_v5  ;;  %v1870_v16 = vld [vmem:[#allocation8 + $0xac] ss:$16 sps:$4 sm:$0xff]   ;;  %v1875_v18 = vld [vmem:[#allocation8 + $0xa8] ss:$16 sps:$4 sm:$0xff]   ;;  %v1879_v19 = vld [vmem:[#allocation8 + $0x84] ss:$16 sps:$4 sm:$0xff]  }
  0x2f   :  { %522 = vmatpush1.bf16.msra.mxu0 %v1846_v8  ;;  %563 = vmatpush1.bf16.msra.mxu1 %v1849_v9  ;;  %v1882_v20 = vld [vmem:[#allocation8 + $0x8c] ss:$16 sps:$4 sm:$0xff]   ;;  %v1886_v21 = vld [vmem:[#allocation8 + $0x80] ss:$16 sps:$4 sm:$0xff]   ;;  %v1889_v22 = vld [vmem:[#allocation8 + $0x88] ss:$16 sps:$4 sm:$0xff]  }
  0x30   :  { %523 = vmatprep.subr.bf16.mxu0 %v1853_v10  ;;  %564 = vmatprep.subr.bf16.mxu1 %v1857_v11  ;;  %v1894_v23 = vld [vmem:[#allocation8 + $0x64] ss:$16 sps:$4 sm:$0xff]   ;;  %v1898_v24 = vld [vmem:[#allocation8 + $0x6c] ss:$16 sps:$4 sm:$0xff]   ;;  %v1901_v26 = vld [vmem:[#allocation8 + $0x60] ss:$16 sps:$4 sm:$0xff]  }
  0x31   :  { %189 = vmatprep.mubr.bf16.mxu0 %v2400_v0  ;;  %262 = vmatprep.mubr.bf16.mxu1 %v2400_v0  ;;  %v1525_v25 = vld [vmem:[#allocation3 + $0x10] sm:$0xff]   ;;  %v1905_v27 = vld [vmem:[#allocation8 + $0x68] ss:$16 sps:$4 sm:$0xff]   ;;  %v1910_v29 = vld [vmem:[#allocation8 + $0x4c] ss:$16 sps:$4 sm:$0xff]   ;;  %v76_v44 = vsub.s32 0, %v75_v42 }
  0x32   :  { %v1907_v28 = vld [vmem:[#allocation8 + $0x44] ss:$16 sps:$4 sm:$0xff]   ;;  %v1915_v30 = vld [vmem:[#allocation8 + $0x40] ss:$16 sps:$4 sm:$0xff]   ;;  %v1917_v31 = vld [vmem:[#allocation8 + $0x48] ss:$16 sps:$4 sm:$0xff]  }
  0x33   :  { %524 = vmatpush1.bf16.msra.mxu0 %v1859_v12  ;;  %565 = vmatpush1.bf16.msra.mxu1 %v1861_v13  ;;  %v1922_v32 = vld [vmem:[#allocation8 + $0x24] ss:$16 sps:$4 sm:$0xff]   ;;  %v1926_v33 = vld [vmem:[#allocation8 + $0x2c] ss:$16 sps:$4 sm:$0xff]   ;;  %v1929_v35 = vld [vmem:[#allocation8 + $0x20] ss:$16 sps:$4 sm:$0xff]  }
  0x34   :  { %525 = vmatprep.subr.bf16.mxu0 %v1867_v15  ;;  %566 = vmatprep.subr.bf16.mxu1 %v1870_v16  ;;  %v1538_v34 = vld [vmem:[#allocation3 + $0x18] sm:$0xff]   ;;  %v1935_v37 = vld [vmem:[#allocation8 + $0x4] ss:$16 sps:$4 sm:$0xff]   ;;  %v1943_v39 = vld [vmem:[#allocation8] ss:$16 sps:$4 sm:$0xff]   ;;  %v88_v45 = vsub.s32 3, %v75_v42 }
  0x35   :  { %v1933_v36 = vld [vmem:[#allocation8 + $0x28] ss:$16 sps:$4 sm:$0xff]   ;;  %v1938_v38 = vld [vmem:[#allocation8 + $0xc] ss:$16 sps:$4 sm:$0xff]   ;;  %v72_v46 = vld [vmem:[%s2398_s3] sm:$0xf] }
  0x36   :  { %1445 = vmatmul.mubr.msk.bf16.gmra.mxu0 %vm134_vm0, %v1512_v14  ;;  %1449 = vmatmul.mubr.msk.bf16.gmra.mxu1 %vm134_vm0, %v1512_v14  ;;  %v1948_v40 = vld [vmem:[#allocation8 + $0x8] ss:$16 sps:$4 sm:$0xff]   ;;  %v1999_v49 = vrot.slane %v72_v46, %v84_v43  ;;  %v80_v50 = vsub.s32 1, %v75_v42  ;;  %v77_v53 = vrot.slane %v72_v46, %v76_v44  ;;  %v2005_v54 = vrot.slane %v72_v46, %v88_v45  ;;  %s1805_s3 = smov [#allocation9]  }
  0x37   :  { %526 = vmatpush1.bf16.msra.mxu0 %v1873_v17  ;;  %199 = vmatprep.mubr.bf16.mxu0 %v2400_v0  ;;  %s1426_s7 = sshll.u32 %s1805_s3, 4  ;;  %s1427_s7 = int_to_ptr.vmem [resolvable:$true] %s1426_s7 }
  0x38   :  { %567 = vmatpush1.bf16.msra.mxu1 %v1875_v18  ;;  %527 = vmatprep.subr.bf16.mxu0 %v1879_v19  ;;  %v81_v57 = vrot.slane %v72_v46, %v80_v50  ;;  %s1771_s8 = scalar_lea.vmem %s1427_s7, 128  ;;  %p1776_p2 = scmp.lt.s32.totalorder %s1427_s7, %s1427_s7 }
  0x39   :  { %568 = vmatprep.subr.bf16.mxu1 %v1882_v20  ;;  %272 = vmatprep.mubr.bf16.mxu1 %v2400_v0  ;;  %p1772_p1 = scmp.ne.s32.totalorder %s1427_s7, %s1771_s8  ;;  %p1777_p3 = scmp.lt.s32.totalorder %s1771_s8, %s1771_s8 }
  0x3b   :  { %528 = vmatpush1.bf16.msra.mxu0 %v1886_v21  ;;  %p1778_p4 = por %p1777_p3, %p1776_p2 }
  0x3c   :  { %569 = vmatpush1.bf16.msra.mxu1 %v1889_v22  ;;  %529 = vmatprep.subr.bf16.mxu0 %v1894_v23 }
  0x3d   :  { %570 = vmatprep.subr.bf16.mxu1 %v1898_v24  ;;  %p1779_p5 = pnand %p1778_p4, %p1772_p1 }
  0x3e   :  { %1446 = vmatmul.mubr.msk.bf16.gmra.mxu0 %vm134_vm0, %v1525_v25  ;;  %1450 = vmatmul.mubr.msk.bf16.gmra.mxu1 %vm134_vm0, %v1525_v25 }
  0x3f   :  { %530 = vmatpush1.bf16.msra.mxu0 %v1901_v26  ;;  %209 = vmatprep.mubr.bf16.mxu0 %v2400_v0 }
  0x40   :  { %571 = vmatpush1.bf16.msra.mxu1 %v1905_v27  ;;  %531 = vmatprep.subr.bf16.mxu0 %v1907_v28 }
  0x41   :  { %572 = vmatprep.subr.bf16.mxu1 %v1910_v29  ;;  %282 = vmatprep.mubr.bf16.mxu1 %v2400_v0 }
  0x43   :  { %532 = vmatpush1.bf16.msra.mxu0 %v1915_v30 }
  0x44   :  { %573 = vmatpush1.bf16.msra.mxu1 %v1917_v31  ;;  %533 = vmatprep.subr.bf16.mxu0 %v1922_v32 }
  0x45   :  { %574 = vmatprep.subr.bf16.mxu1 %v1926_v33 }
  0x46   :  { %1447 = vmatmul.mubr.msk.bf16.gmra.mxu0 %vm134_vm0, %v1538_v34  ;;  %1451 = vmatmul.mubr.msk.bf16.gmra.mxu1 %vm134_vm0, %v1538_v34 }
  0x47   :  { %534 = vmatpush1.bf16.msra.mxu0 %v1929_v35  ;;  %553 = vmatprep.mubr.bf16.mxu0 %v2400_v0 }
  0x48   :  { %575 = vmatpush1.bf16.msra.mxu1 %v1933_v36  ;;  %535 = vmatprep.subr.bf16.mxu0 %v1935_v37 }
  0x49   :  { %576 = vmatprep.subr.bf16.mxu1 %v1938_v38  ;;  %594 = vmatprep.mubr.bf16.mxu1 %v2400_v0 }
  0x4b   :  { %536 = vmatpush1.bf16.msra.mxu0 %v1943_v39 }
  0x4c   :  { %577 = vmatpush1.bf16.msra.mxu1 %v1948_v40  ;;  %634 = vmatprep.subr.bf16.mxu0 %v1842_v6 }
  0x4d   :  { %675 = vmatprep.subr.bf16.mxu1 %v1844_v7 }
  0x4e   :  { %554 = vmatmul.mubr.bf16.vlgmr.msra.gmra.mxu0 %v2400_v0 }
  0x4f   :  { %595 = vmatmul.mubr.bf16.vlgmr.msra.gmra.mxu1 %v2400_v0  ;;  %635 = vmatpush1.bf16.msra.mxu0 %v1846_v8 }
  0x50   :  { %676 = vmatpush1.bf16.msra.mxu1 %v1849_v9  ;;  %636 = vmatprep.subr.bf16.mxu0 %v1853_v10 }
  0x51   :  { %677 = vmatprep.subr.bf16.mxu1 %v1857_v11  ;;  %666 = vmatprep.mubr.bf16.mxu0 %v2400_v0 }
  0x52   :  { %707 = vmatprep.mubr.bf16.mxu1 %v2400_v0 }
  0x53   :  { %637 = vmatpush1.bf16.msra.mxu0 %v1859_v12 }
  0x54   :  { %678 = vmatpush1.bf16.msra.mxu1 %v1861_v13  ;;  %638 = vmatprep.subr.bf16.mxu0 %v1867_v15 }
  0x55   :  { %679 = vmatprep.subr.bf16.mxu1 %v1870_v16 }
  0x57   :  { %639 = vmatpush1.bf16.msra.mxu0 %v1873_v17 }
  0x58   :  { %680 = vmatpush1.bf16.msra.mxu1 %v1875_v18  ;;  %640 = vmatprep.subr.bf16.mxu0 %v1879_v19 }
  0x59   :  { %681 = vmatprep.subr.bf16.mxu1 %v1882_v20 }
  0x5b   :  { %641 = vmatpush1.bf16.msra.mxu0 %v1886_v21 }
  0x5c   :  { %682 = vmatpush1.bf16.msra.mxu1 %v1889_v22  ;;  %642 = vmatprep.subr.bf16.mxu0 %v1894_v23 }
  0x5d   :  { %683 = vmatprep.subr.bf16.mxu1 %v1898_v24 }
  0x5f   :  { %643 = vmatpush1.bf16.msra.mxu0 %v1901_v26 }
  0x60   :  { %684 = vmatpush1.bf16.msra.mxu1 %v1905_v27  ;;  %644 = vmatprep.subr.bf16.mxu0 %v1907_v28 }
  0x61   :  { %685 = vmatprep.subr.bf16.mxu1 %v1910_v29 }
  0x63   :  { %645 = vmatpush1.bf16.msra.mxu0 %v1915_v30 }
  0x64   :  { %686 = vmatpush1.bf16.msra.mxu1 %v1917_v31  ;;  %646 = vmatprep.subr.bf16.mxu0 %v1922_v32 }
  0x65   :  { %687 = vmatprep.subr.bf16.mxu1 %v1926_v33 }
  0x67   :  { %647 = vmatpush1.bf16.msra.mxu0 %v1929_v35 }
  0x68   :  { %688 = vmatpush1.bf16.msra.mxu1 %v1933_v36  ;;  %648 = vmatprep.subr.bf16.mxu0 %v1935_v37 }
  0x69   :  { %689 = vmatprep.subr.bf16.mxu1 %v1938_v38 }
  0x6b   :  { %649 = vmatpush1.bf16.msra.mxu0 %v1943_v39 }
  0x6c   :  { %690 = vmatpush1.bf16.msra.mxu1 %v1948_v40  ;;  %747 = vmatprep.subr.bf16.mxu0 %v1842_v6 }
  0x6d   :  { %788 = vmatprep.subr.bf16.mxu1 %v1844_v7 }
  0xee   :  { %v1995_v47 = vpop.f32.mrf.mxu0  ;;  %v1997_v48 = vpop.f32.mrf.mxu1 }
  0xf0   :  { %v2001_v51 = vpop.f32.mrf.mxu0  ;;  %v2003_v52 = vpop.f32.mrf.mxu1 }
  0xf2   :  { %v185_v55 = vpop.f32.mrf.mxu0  ;;  %v258_v56 = vpop.f32.mrf.mxu1 }
  0xf3   :  { %v2007_v58 = vadd.f32 %v185_v55, %v77_v53  ;;  %v2010_v59 = vadd.f32 %v258_v56, %v1999_v49 }
  0xf4   :  { %v187_v60 = vpop.f32.mrf.mxu0  ;;  %v260_v61 = vpop.f32.mrf.mxu1 }
  0xf5   :  { %v2012_v62 = vadd.f32 %v187_v60, %v81_v57  ;;  %v2015_v63 = vadd.f32 %v260_v61, %v2005_v54 }
  0xf6   :  { %v191_v1 = vpop.f32.mrf.mxu0  ;;  %v264_v2 = vpop.f32.mrf.mxu1 }
  0xf7   :  { %v2017_v3 = vadd.f32 %v191_v1, %v77_v53  ;;  %v2020_v4 = vadd.f32 %v264_v2, %v1999_v49 }
  0xf8   :  { %v193_v5 = vpop.f32.mrf.mxu0  ;;  %v266_v14 = vpop.f32.mrf.mxu1 }
  0xf9   :  { %2402 = vst [vmem:[#allocation13_spill] sm:$0xff] %v2020_v4  ;;  %v2022_v25 = vadd.f32 %v193_v5, %v81_v57  ;;  %v2025_v34 = vadd.f32 %v266_v14, %v2005_v54 }
  0xfa   :  { %v195_v41 = vpop.f32.mrf.mxu0  ;;  %v268_v42 = vpop.f32.mrf.mxu1 }
  0xfb   :  { %2403 = vst [vmem:[#allocation14_spill] sm:$0xff] %v2025_v34  ;;  %v2027_v43 = vadd.f32 %v195_v41, %v77_v53  ;;  %v2030_v44 = vadd.f32 %v268_v42, %v1999_v49 }
  0xfc   :  { %v197_v45 = vpop.f32.mrf.mxu0  ;;  %v270_v46 = vpop.f32.mrf.mxu1 }
  0xfd   :  { %2404 = vst [vmem:[#allocation15_spill] sm:$0xff] %v2027_v43  ;;  %2405 = vst [vmem:[#allocation16_spill] sm:$0xff] %v2030_v44  ;;  %v2032_v50 = vadd.f32 %v197_v45, %v81_v57  ;;  %v2035_v55 = vadd.f32 %v270_v46, %v2005_v54 }
  0xfe   :  { %v201_v56 = vpop.f32.mrf.mxu0  ;;  %v274_v60 = vpop.f32.mrf.mxu1 }
  0xff   :  { %2406 = vst [vmem:[#allocation17_spill] sm:$0xff] %v2032_v50  ;;  %2407 = vst [vmem:[#allocation18_spill] sm:$0xff] %v2035_v55  ;;  %v2037_v61 = vadd.f32 %v201_v56, %v77_v53  ;;  %v2040_v1 = vadd.f32 %v274_v60, %v1999_v49 }
 0x100   :  { %v203_v2 = vpop.f32.mrf.mxu0  ;;  %v276_v5 = vpop.f32.mrf.mxu1 }
 0x101   :  { %2408 = vst [vmem:[#allocation19_spill] sm:$0xff] %v2037_v61  ;;  %2409 = vst [vmem:[#allocation20_spill] sm:$0xff] %v2040_v1  ;;  %v2042_v14 = vadd.f32 %v203_v2, %v81_v57  ;;  %v2045_v41 = vadd.f32 %v276_v5, %v2005_v54 }
 0x102   :  { %v205_v42 = vpop.f32.mrf.mxu0  ;;  %v278_v45 = vpop.f32.mrf.mxu1 }
 0x103   :  { %2410 = vst [vmem:[#allocation21_spill] sm:$0xff] %v2042_v14  ;;  %2411 = vst [vmem:[#allocation22_spill] sm:$0xff] %v2045_v41  ;;  %v2047_v0 = vadd.f32 %v205_v42, %v77_v53  ;;  %v2050_v46 = vadd.f32 %v278_v45, %v1999_v49 }
 0x104   :  { %v207_v44 = vpop.f32.mrf.mxu0  ;;  %v280_v56 = vpop.f32.mrf.mxu1 }
 0x105   :  { %2412 = vst [vmem:[#allocation23_spill] sm:$0xff] %v2047_v0  ;;  %2413 = vst [vmem:[#allocation24_spill] sm:$0xff] %v2050_v46  ;;  %v2052_v61 = vadd.f32 %v207_v44, %v81_v57  ;;  %v2055_v60 = vadd.f32 %v280_v56, %v2005_v54 }
 0x106   :  { %v211_v1 = vpop.f32.mrf.mxu0  ;;  %v284_v2 = vpop.f32.mrf.mxu1 }
 0x107   :  { %2414 = vst [vmem:[#allocation25_spill] sm:$0xff] %v2052_v61  ;;  %2415 = vst [vmem:[#allocation26_spill] sm:$0xff] %v2055_v60  ;;  %v2057_v14 = vadd.f32 %v211_v1, %v77_v53  ;;  %v2060_v5 = vadd.f32 %v284_v2, %v1999_v49 }
 0x108   :  { %v213_v41 = vpop.f32.mrf.mxu0  ;;  %v286_v42 = vpop.f32.mrf.mxu1 }
 0x109   :  { %2416 = vst [vmem:[#allocation27_spill] sm:$0xff] %v2057_v14  ;;  %2417 = vst [vmem:[#allocation28_spill] sm:$0xff] %v2060_v5  ;;  %v2062_v0 = vadd.f32 %v213_v41, %v81_v57  ;;  %v2065_v45 = vadd.f32 %v286_v42, %v2005_v54  ;;  %v182_v14 = vadd.f32 %v1995_v47, %v77_v53 }
 0x10a   :  { %v215_v46 = vpop.f32.mrf.mxu0  ;;  %v288_v44 = vpop.f32.mrf.mxu1  ;;  %v184_v42 = vadd.f32 %v2001_v51, %v81_v57 }
 0x10b   :  { %2418 = vst [vmem:[#allocation29_spill] sm:$0xff] %v2062_v0  ;;  %2419 = vst [vmem:[#allocation30_spill] sm:$0xff] %v2065_v45  ;;  %v2067_v61 = vadd.f32 %v215_v46, %v77_v53  ;;  %v2070_v56 = vadd.f32 %v288_v44, %v1999_v49 }
 0x10c   :  { %v217_v60 = vpop.f32.mrf.mxu0  ;;  %v290_v1 = vpop.f32.mrf.mxu1 }
 0x10d   :  { %2420 = vst [vmem:[#allocation31_spill] sm:$0xff] %v2067_v61  ;;  %2421 = vst [vmem:[#allocation32_spill] sm:$0xff] %v2070_v56  ;;  %v2073_v2 = vadd.f32 %v217_v60, %v81_v57  ;;  %v2076_v5 = vadd.f32 %v290_v1, %v2005_v54  ;;  %v257_v60 = vadd.f32 %v2003_v52, %v2005_v54 }
 0x10e   :  { %v555_v41 = vpop.f32.mrf.mxu0  ;;  %v255_v57 = vadd.f32 %v1997_v48, %v1999_v49 }
 0x10f   :  { %v603_v45 = vadd.f32 %v555_v41, %v182_v14  ;;  %v596_v0 = vpop.f32.mrf.mxu1 }
 0x110   :  { %v557_v55 = vpop.f32.mrf.mxu0 }
 0x111   :  { %v607_v46 = vsub.f32 0.0, %v603_v45  ;;  %v604_v61 = vadd.f32 %v557_v55, %v184_v42  ;;  %v598_v50 = vpop.f32.mrf.mxu1  ;;  %v605_v45 = vadd.f32 %v596_v0, %v255_v57 }
 0x112   :  { %v559_v44 = vpop.f32.mrf.mxu0  ;;  %v606_v1 = vadd.f32 %v598_v50, %v257_v60 }
 0x113   :  { %v608_v56 = vmul.f32 1.442695, %v607_v46  ;;  %v612_v43 = vsub.f32 0.0, %v604_v61  ;;  %v600_v4 = vpop.f32.mrf.mxu1 }
 0x114   :  { %v560_v34 = vpop.f32.mrf.mxu0  ;;  %v618_v51 = vsub.f32 0.0, %v606_v1 }
 0x115   :  { %1551 = vpow2.f32 %v608_v56  ;;  %v613_v47 = vmul.f32 1.442695, %v612_v43  ;;  %v601_v53 = vpop.f32.mrf.mxu1 }
 0x116   :  { %v619_v14 = vmul.f32 1.442695, %v618_v51 }
 0x117   :  { %1553 = vpow2.f32 %v613_v47  ;;  %v2422_v47 = vmov 0  }
 0x118   :  { %1555 = vpow2.f32 %v619_v14 }
 0x122   :  { %v1552_v55 = vpop.eup %1551 }
 0x123   :  { %v610_v41 = vadd.f32 1.0, %v1552_v55 }
 0x124   :  { %v1554_v42 = vpop.eup %1553 }
 0x125   :  { %1557 = vrcp.f32 %v610_v41  ;;  %v615_v4 = vadd.f32 1.0, %v1554_v42  ;;  %v1556_v34 = vpop.eup %1555 }
 0x126   :  { %1559 = vtanh.f32 %v605_v45  ;;  %v621_v54 = vadd.f32 1.0, %v1556_v34 }
 0x127   :  { %1561 = vrcp.f32 %v615_v4 }
 0x128   :  { %1563 = vrcp.f32 %v621_v54 }
 0x132   :  { %v1558_v43 = vpop.eup %1557 }
 0x133   :  { %v1560_v61 = vpop.eup %1559 }
 0x134   :  { %v1562_v52 = vpop.eup %1561  ;;  %v624_v56 = vmul.f32 %v1560_v61, %v1558_v43 }
 0x135   :  { %v623_v50 = vmul.f32 0.0, %v1562_v52  ;;  %v1564_v0 = vpop.eup %1563 }
 0x137   :  { %v2083_v46 = vadd.f32 %v624_v56, %v623_v50 }
 0x139   :  { %1565 = vtanh.f32 %v2083_v46 }
 0x146   :  { %v1566_v48 = vpop.eup %1565 }
 0x147   :  { %v627_v49 = vmul.f32 %v1566_v48, %v1564_v0 }
 0x149   :  { %v633_v44 = vpack.c.bf16 %v627_v49, %v627_v49 }
 0x14b   :  { %667 = vmatmul.mubr.bf16.vlgmr.msra.gmra.mxu0 %v633_v44  ;;  %708 = vmatmul.mubr.bf16.vlgmr.msra.gmra.mxu1 %v633_v44 }
 0x14c   :  { %748 = vmatpush1.bf16.msra.mxu0 %v1846_v8  ;;  %789 = vmatpush1.bf16.msra.mxu1 %v1849_v9 }
 0x14d   :  { %749 = vmatprep.subr.bf16.mxu0 %v1853_v10  ;;  %790 = vmatprep.subr.bf16.mxu1 %v1857_v11 }
 0x14e   :  { %779 = vmatprep.mubr.bf16.mxu0 %v2422_v47  ;;  %820 = vmatprep.mubr.bf16.mxu1 %v2422_v47 }
 0x150   :  { %750 = vmatpush1.bf16.msra.mxu0 %v1859_v12  ;;  %791 = vmatpush1.bf16.msra.mxu1 %v1861_v13 }
 0x151   :  { %751 = vmatprep.subr.bf16.mxu0 %v1867_v15  ;;  %792 = vmatprep.subr.bf16.mxu1 %v1870_v16 }
 0x154   :  { %752 = vmatpush1.bf16.msra.mxu0 %v1873_v17  ;;  %793 = vmatpush1.bf16.msra.mxu1 %v1875_v18 }
 0x155   :  { %753 = vmatprep.subr.bf16.mxu0 %v1879_v19  ;;  %794 = vmatprep.subr.bf16.mxu1 %v1882_v20 }
 0x158   :  { %754 = vmatpush1.bf16.msra.mxu0 %v1886_v21  ;;  %795 = vmatpush1.bf16.msra.mxu1 %v1889_v22 }
 0x159   :  { %755 = vmatprep.subr.bf16.mxu0 %v1894_v23  ;;  %796 = vmatprep.subr.bf16.mxu1 %v1898_v24 }
 0x15c   :  { %756 = vmatpush1.bf16.msra.mxu0 %v1901_v26  ;;  %797 = vmatpush1.bf16.msra.mxu1 %v1905_v27 }
 0x15d   :  { %757 = vmatprep.subr.bf16.mxu0 %v1907_v28  ;;  %798 = vmatprep.subr.bf16.mxu1 %v1910_v29 }
 0x160   :  { %758 = vmatpush1.bf16.msra.mxu0 %v1915_v30  ;;  %799 = vmatpush1.bf16.msra.mxu1 %v1917_v31 }
 0x161   :  { %759 = vmatprep.subr.bf16.mxu0 %v1922_v32  ;;  %800 = vmatprep.subr.bf16.mxu1 %v1926_v33 }
 0x164   :  { %760 = vmatpush1.bf16.msra.mxu0 %v1929_v35  ;;  %801 = vmatpush1.bf16.msra.mxu1 %v1933_v36 }
 0x165   :  { %761 = vmatprep.subr.bf16.mxu0 %v1935_v37  ;;  %802 = vmatprep.subr.bf16.mxu1 %v1938_v38 }
 0x168   :  { %762 = vmatpush1.bf16.msra.mxu0 %v1943_v39  ;;  %803 = vmatpush1.bf16.msra.mxu1 %v1948_v40 }
 0x169   :  { %860 = vmatprep.subr.bf16.mxu0 %v1842_v6  ;;  %901 = vmatprep.subr.bf16.mxu1 %v1844_v7 }
 0x20b   :  { %v668_v53 = vpop.f32.mrf.mxu0  ;;  %v709_v60 = vpop.f32.mrf.mxu1 }
 0x20c   :  { %v716_v1 = vadd.f32 %v668_v53, %v2007_v58  ;;  %v718_v50 = vadd.f32 %v709_v60, %v2010_v59 }
 0x20d   :  { %v670_v51 = vpop.f32.mrf.mxu0  ;;  %v711_v57 = vpop.f32.mrf.mxu1 }
 0x20e   :  { %v720_v14 = vsub.f32 0.0, %v716_v1  ;;  %v717_v55 = vadd.f32 %v670_v51, %v2012_v62  ;;  %v719_v52 = vadd.f32 %v711_v57, %v2015_v63 }
 0x20f   :  { %v672_v45 = vpop.f32.mrf.mxu0  ;;  %v713_v41 = vpop.f32.mrf.mxu1 }
 0x210   :  { %v721_v42 = vmul.f32 1.442695, %v720_v14  ;;  %v725_v4 = vsub.f32 0.0, %v717_v55  ;;  %v731_v54 = vsub.f32 0.0, %v719_v52 }
 0x211   :  { %v673_v34 = vpop.f32.mrf.mxu0  ;;  %v714_v43 = vpop.f32.mrf.mxu1 }
 0x212   :  { %1567 = vpow2.f32 %v721_v42  ;;  %v726_v61 = vmul.f32 1.442695, %v725_v4  ;;  %v732_v58 = vmul.f32 1.442695, %v731_v54 }
 0x214   :  { %1569 = vpow2.f32 %v726_v61 }
 0x215   :  { %1571 = vtanh.f32 %v718_v50 }
 0x216   :  { %1573 = vpow2.f32 %v732_v58 }
 0x21f   :  { %v1568_v56 = vpop.eup %1567 }
 0x220   :  { %v723_v0 = vadd.f32 1.0, %v1568_v56 }
 0x221   :  { %v1570_v48 = vpop.eup %1569 }
 0x222   :  { %1575 = vrcp.f32 %v723_v0  ;;  %v728_v62 = vadd.f32 1.0, %v1570_v48  ;;  %v1572_v49 = vpop.eup %1571 }
 0x223   :  { %v1574_v44 = vpop.eup %1573 }
 0x224   :  { %1577 = vrcp.f32 %v728_v62  ;;  %v734_v14 = vadd.f32 1.0, %v1574_v44  ;;  %v2423_v62 = vld [vmem:[#allocation14_spill] sm:$0xff] }
 0x226   :  { %1579 = vrcp.f32 %v734_v14 }
 0x22f   :  { %v1576_v53 = vpop.eup %1575 }
 0x230   :  { %v737_v1 = vmul.f32 %v1576_v53, %v1572_v49  ;;  %v2424_v53 = vld [vmem:[#allocation13_spill] sm:$0xff] }
 0x231   :  { %v1578_v51 = vpop.eup %1577 }
 0x232   :  { %v736_v63 = vmul.f32 %v1578_v51, %v2083_v46 }
 0x233   :  { %v1580_v59 = vpop.eup %1579 }
 0x234   :  { %v2125_v57 = vadd.f32 %v737_v1, %v736_v63 }
 0x236   :  { %1581 = vtanh.f32 %v2125_v57 }
 0x243   :  { %v1582_v60 = vpop.eup %1581 }
 0x244   :  { %v740_v55 = vmul.f32 %v1582_v60, %v1580_v59 }
 0x246   :  { %v746_v45 = vpack.c.bf16 %v740_v55, %v740_v55 }
 0x248   :  { %780 = vmatmul.mubr.bf16.vlgmr.msra.gmra.mxu0 %v746_v45  ;;  %821 = vmatmul.mubr.bf16.vlgmr.msra.gmra.mxu1 %v746_v45 }
 0x249   :  { %861 = vmatpush1.bf16.msra.mxu0 %v1846_v8  ;;  %902 = vmatpush1.bf16.msra.mxu1 %v1849_v9 }
 0x24a   :  { %862 = vmatprep.subr.bf16.mxu0 %v1853_v10  ;;  %903 = vmatprep.subr.bf16.mxu1 %v1857_v11 }
 0x24b   :  { %892 = vmatprep.mubr.bf16.mxu0 %v2422_v47  ;;  %933 = vmatprep.mubr.bf16.mxu1 %v2422_v47 }
 0x24d   :  { %863 = vmatpush1.bf16.msra.mxu0 %v1859_v12  ;;  %904 = vmatpush1.bf16.msra.mxu1 %v1861_v13 }
 0x24e   :  { %864 = vmatprep.subr.bf16.mxu0 %v1867_v15  ;;  %905 = vmatprep.subr.bf16.mxu1 %v1870_v16 }
 0x251   :  { %865 = vmatpush1.bf16.msra.mxu0 %v1873_v17  ;;  %906 = vmatpush1.bf16.msra.mxu1 %v1875_v18 }
 0x252   :  { %866 = vmatprep.subr.bf16.mxu0 %v1879_v19  ;;  %907 = vmatprep.subr.bf16.mxu1 %v1882_v20 }
 0x255   :  { %867 = vmatpush1.bf16.msra.mxu0 %v1886_v21  ;;  %908 = vmatpush1.bf16.msra.mxu1 %v1889_v22 }
 0x256   :  { %868 = vmatprep.subr.bf16.mxu0 %v1894_v23  ;;  %909 = vmatprep.subr.bf16.mxu1 %v1898_v24 }
 0x259   :  { %869 = vmatpush1.bf16.msra.mxu0 %v1901_v26  ;;  %910 = vmatpush1.bf16.msra.mxu1 %v1905_v27 }
 0x25a   :  { %870 = vmatprep.subr.bf16.mxu0 %v1907_v28  ;;  %911 = vmatprep.subr.bf16.mxu1 %v1910_v29 }
 0x25d   :  { %871 = vmatpush1.bf16.msra.mxu0 %v1915_v30  ;;  %912 = vmatpush1.bf16.msra.mxu1 %v1917_v31 }
 0x25e   :  { %872 = vmatprep.subr.bf16.mxu0 %v1922_v32  ;;  %913 = vmatprep.subr.bf16.mxu1 %v1926_v33 }
 0x261   :  { %873 = vmatpush1.bf16.msra.mxu0 %v1929_v35  ;;  %914 = vmatpush1.bf16.msra.mxu1 %v1933_v36 }
 0x262   :  { %874 = vmatprep.subr.bf16.mxu0 %v1935_v37  ;;  %915 = vmatprep.subr.bf16.mxu1 %v1938_v38 }
 0x265   :  { %875 = vmatpush1.bf16.msra.mxu0 %v1943_v39  ;;  %916 = vmatpush1.bf16.msra.mxu1 %v1948_v40 }
 0x266   :  { %973 = vmatprep.subr.bf16.mxu0 %v1842_v6  ;;  %1014 = vmatprep.subr.bf16.mxu1 %v1844_v7 }
 0x308   :  { %v781_v46 = vpop.f32.mrf.mxu0  ;;  %v822_v41 = vpop.f32.mrf.mxu1 }
 0x309   :  { %v829_v42 = vadd.f32 %v781_v46, %v2017_v3  ;;  %v831_v1 = vadd.f32 %v822_v41, %v2424_v53 }
 0x30a   :  { %v783_v4 = vpop.f32.mrf.mxu0  ;;  %v824_v34 = vpop.f32.mrf.mxu1 }
 0x30b   :  { %v833_v43 = vsub.f32 0.0, %v829_v42  ;;  %v830_v61 = vadd.f32 %v783_v4, %v2022_v25  ;;  %v832_v49 = vadd.f32 %v824_v34, %v2423_v62  ;;  %v2426_v62 = vld [vmem:[#allocation17_spill] sm:$0xff] }
 0x30c   :  { %v785_v52 = vpop.f32.mrf.mxu0  ;;  %v826_v54 = vpop.f32.mrf.mxu1 }
 0x30d   :  { %v834_v50 = vmul.f32 1.442695, %v833_v43  ;;  %v838_v58 = vsub.f32 0.0, %v830_v61  ;;  %v844_v44 = vsub.f32 0.0, %v832_v49 }
 0x30e   :  { %v786_v56 = vpop.f32.mrf.mxu0  ;;  %v827_v0 = vpop.f32.mrf.mxu1 }
 0x30f   :  { %1583 = vpow2.f32 %v834_v50  ;;  %v839_v48 = vmul.f32 1.442695, %v838_v58  ;;  %v845_v3 = vmul.f32 1.442695, %v844_v44  ;;  %v2425_v50 = vld [vmem:[#allocation15_spill] sm:$0xff] }
 0x311   :  { %1585 = vpow2.f32 %v839_v48 }
 0x312   :  { %1587 = vtanh.f32 %v831_v1 }
 0x313   :  { %1589 = vpow2.f32 %v845_v3 }
 0x31c   :  { %v1584_v51 = vpop.eup %1583 }
 0x31d   :  { %v836_v14 = vadd.f32 1.0, %v1584_v51 }
 0x31e   :  { %v1586_v63 = vpop.eup %1585 }
 0x31f   :  { %1591 = vrcp.f32 %v836_v14  ;;  %v841_v25 = vadd.f32 1.0, %v1586_v63  ;;  %v1588_v59 = vpop.eup %1587 }
 0x320   :  { %v1590_v60 = vpop.eup %1589 }
 0x321   :  { %1593 = vrcp.f32 %v841_v25  ;;  %v847_v42 = vadd.f32 1.0, %v1590_v60 }
 0x323   :  { %1595 = vrcp.f32 %v847_v42 }
 0x32c   :  { %v1592_v55 = vpop.eup %1591 }
 0x32d   :  { %v850_v45 = vmul.f32 %v1592_v55, %v1588_v59  ;;  %v2428_v59 = vld [vmem:[#allocation16_spill] sm:$0xff] }
 0x32e   :  { %v1594_v46 = vpop.eup %1593 }
 0x32f   :  { %v849_v4 = vmul.f32 %v1594_v46, %v2125_v57 }
 0x330   :  { %v1596_v41 = vpop.eup %1595 }
 0x331   :  { %v2167_v34 = vadd.f32 %v850_v45, %v849_v4 }
 0x333   :  { %1597 = vtanh.f32 %v2167_v34 }
 0x340   :  { %v1598_v43 = vpop.eup %1597 }
 0x341   :  { %v853_v61 = vmul.f32 %v1598_v43, %v1596_v41 }
 0x343   :  { %v859_v52 = vpack.c.bf16 %v853_v61, %v853_v61 }
 0x345   :  { %893 = vmatmul.mubr.bf16.vlgmr.msra.gmra.mxu0 %v859_v52  ;;  %934 = vmatmul.mubr.bf16.vlgmr.msra.gmra.mxu1 %v859_v52 }
 0x346   :  { %974 = vmatpush1.bf16.msra.mxu0 %v1846_v8  ;;  %1015 = vmatpush1.bf16.msra.mxu1 %v1849_v9 }
 0x347   :  { %975 = vmatprep.subr.bf16.mxu0 %v1853_v10  ;;  %1016 = vmatprep.subr.bf16.mxu1 %v1857_v11 }
 0x348   :  { %1005 = vmatprep.mubr.bf16.mxu0 %v2422_v47  ;;  %1046 = vmatprep.mubr.bf16.mxu1 %v2422_v47 }
 0x34a   :  { %976 = vmatpush1.bf16.msra.mxu0 %v1859_v12  ;;  %1017 = vmatpush1.bf16.msra.mxu1 %v1861_v13 }
 0x34b   :  { %977 = vmatprep.subr.bf16.mxu0 %v1867_v15  ;;  %1018 = vmatprep.subr.bf16.mxu1 %v1870_v16 }
 0x34e   :  { %978 = vmatpush1.bf16.msra.mxu0 %v1873_v17  ;;  %1019 = vmatpush1.bf16.msra.mxu1 %v1875_v18 }
 0x34f   :  { %979 = vmatprep.subr.bf16.mxu0 %v1879_v19  ;;  %1020 = vmatprep.subr.bf16.mxu1 %v1882_v20 }
 0x352   :  { %980 = vmatpush1.bf16.msra.mxu0 %v1886_v21  ;;  %1021 = vmatpush1.bf16.msra.mxu1 %v1889_v22 }
 0x353   :  { %981 = vmatprep.subr.bf16.mxu0 %v1894_v23  ;;  %1022 = vmatprep.subr.bf16.mxu1 %v1898_v24 }
 0x356   :  { %982 = vmatpush1.bf16.msra.mxu0 %v1901_v26  ;;  %1023 = vmatpush1.bf16.msra.mxu1 %v1905_v27 }
 0x357   :  { %983 = vmatprep.subr.bf16.mxu0 %v1907_v28  ;;  %1024 = vmatprep.subr.bf16.mxu1 %v1910_v29 }
 0x35a   :  { %984 = vmatpush1.bf16.msra.mxu0 %v1915_v30  ;;  %1025 = vmatpush1.bf16.msra.mxu1 %v1917_v31 }
 0x35b   :  { %985 = vmatprep.subr.bf16.mxu0 %v1922_v32  ;;  %1026 = vmatprep.subr.bf16.mxu1 %v1926_v33 }
 0x35e   :  { %986 = vmatpush1.bf16.msra.mxu0 %v1929_v35  ;;  %1027 = vmatpush1.bf16.msra.mxu1 %v1933_v36 }
 0x35f   :  { %987 = vmatprep.subr.bf16.mxu0 %v1935_v37  ;;  %1028 = vmatprep.subr.bf16.mxu1 %v1938_v38 }
 0x362   :  { %988 = vmatpush1.bf16.msra.mxu0 %v1943_v39  ;;  %1029 = vmatpush1.bf16.msra.mxu1 %v1948_v40 }
 0x363   :  { %1086 = vmatprep.subr.bf16.mxu0 %v1842_v6  ;;  %1127 = vmatprep.subr.bf16.mxu1 %v1844_v7  ;;  %v2427_v6 = vld [vmem:[#allocation18_spill] sm:$0xff] }
 0x405   :  { %v894_v57 = vpop.f32.mrf.mxu0  ;;  %v935_v54 = vpop.f32.mrf.mxu1 }
 0x406   :  { %v942_v58 = vadd.f32 %v894_v57, %v2425_v50  ;;  %v944_v60 = vadd.f32 %v935_v54, %v2428_v59 }
 0x407   :  { %v896_v56 = vpop.f32.mrf.mxu0  ;;  %v937_v0 = vpop.f32.mrf.mxu1 }
 0x408   :  { %v946_v48 = vsub.f32 0.0, %v942_v58  ;;  %v943_v49 = vadd.f32 %v896_v56, %v2426_v62  ;;  %v945_v7 = vadd.f32 %v937_v0, %v2427_v6 }
 0x409   :  { %v898_v44 = vpop.f32.mrf.mxu0  ;;  %v939_v53 = vpop.f32.mrf.mxu1 }
 0x40a   :  { %v947_v1 = vmul.f32 1.442695, %v946_v48  ;;  %v951_v3 = vsub.f32 0.0, %v943_v49  ;;  %v957_v25 = vsub.f32 0.0, %v945_v7 }
 0x40b   :  { %v899_v51 = vpop.f32.mrf.mxu0  ;;  %v940_v14 = vpop.f32.mrf.mxu1 }
 0x40c   :  { %1599 = vpow2.f32 %v947_v1  ;;  %v952_v63 = vmul.f32 1.442695, %v951_v3  ;;  %v958_v55 = vmul.f32 1.442695, %v957_v25 }
 0x40e   :  { %1601 = vpow2.f32 %v952_v63 }
 0x40f   :  { %1603 = vtanh.f32 %v944_v60  ;;  %v2258_v60 = vld [vmem:[#allocation8 + $0xe0] ss:$16 sps:$4 sm:$0xff]  }
 0x410   :  { %1605 = vpow2.f32 %v958_v55  ;;  %v2261_v55 = vld [vmem:[#allocation8 + $0xe8] ss:$16 sps:$4 sm:$0xff]  }
 0x419   :  { %v1600_v45 = vpop.eup %1599 }
 0x41a   :  { %v949_v46 = vadd.f32 1.0, %v1600_v45  ;;  %v2264_v45 = vld [vmem:[#allocation8 + $0xc4] ss:$16 sps:$4 sm:$0xff]  }
 0x41b   :  { %v1602_v42 = vpop.eup %1601 }
 0x41c   :  { %1607 = vrcp.f32 %v949_v46  ;;  %v954_v4 = vadd.f32 1.0, %v1602_v42  ;;  %v1604_v41 = vpop.eup %1603  ;;  %v2267_v46 = vld [vmem:[#allocation8 + $0xcc] ss:$16 sps:$4 sm:$0xff]   ;;  %v2272_v42 = vld [vmem:[#allocation8 + $0xc0] ss:$16 sps:$4 sm:$0xff]  }
 0x41d   :  { %v1606_v43 = vpop.eup %1605 }
 0x41e   :  { %1609 = vrcp.f32 %v954_v4  ;;  %v960_v50 = vadd.f32 1.0, %v1606_v43  ;;  %v2275_v4 = vld [vmem:[#allocation8 + $0xc8] ss:$16 sps:$4 sm:$0xff]   ;;  %v2281_v43 = vld [vmem:[#allocation8 + $0xac] ss:$16 sps:$4 sm:$0xff]  }
 0x420   :  { %1611 = vrcp.f32 %v960_v50  ;;  %v2293_v50 = vld [vmem:[#allocation8 + $0x8c] ss:$16 sps:$4 sm:$0xff]  }
 0x429   :  { %v1608_v61 = vpop.eup %1607 }
 0x42a   :  { %v963_v52 = vmul.f32 %v1608_v61, %v1604_v41  ;;  %v2278_v41 = vld [vmem:[#allocation8 + $0xa4] ss:$16 sps:$4 sm:$0xff]   ;;  %v2284_v61 = vld [vmem:[#allocation8 + $0xa0] ss:$16 sps:$4 sm:$0xff]  }
 0x42b   :  { %v1610_v57 = vpop.eup %1609 }
 0x42c   :  { %v962_v58 = vmul.f32 %v1610_v57, %v2167_v34  ;;  %v2290_v57 = vld [vmem:[#allocation8 + $0x84] ss:$16 sps:$4 sm:$0xff]  }
 0x42d   :  { %v1612_v54 = vpop.eup %1611 }
 0x42e   :  { %v2209_v56 = vadd.f32 %v963_v52, %v962_v58  ;;  %v2287_v52 = vld [vmem:[#allocation8 + $0xa8] ss:$16 sps:$4 sm:$0xff]   ;;  %v2296_v58 = vld [vmem:[#allocation8 + $0x80] ss:$16 sps:$4 sm:$0xff]  }
 0x430   :  { %1613 = vtanh.f32 %v2209_v56 }
 0x43d   :  { %v1614_v0 = vpop.eup %1613 }
 0x43e   :  { %v966_v48 = vmul.f32 %v1614_v0, %v1612_v54  ;;  %v2302_v54 = vld [vmem:[#allocation8 + $0x64] ss:$16 sps:$4 sm:$0xff]   ;;  %v2305_v0 = vld [vmem:[#allocation8 + $0x6c] ss:$16 sps:$4 sm:$0xff]  }
 0x440   :  { %v972_v62 = vpack.c.bf16 %v966_v48, %v966_v48  ;;  %v2308_v48 = vld [vmem:[#allocation8 + $0x60] ss:$16 sps:$4 sm:$0xff]  }
 0x442   :  { %1006 = vmatmul.mubr.bf16.vlgmr.msra.gmra.mxu0 %v972_v62  ;;  %1047 = vmatmul.mubr.bf16.vlgmr.msra.gmra.mxu1 %v972_v62  ;;  %v2311_v62 = vld [vmem:[#allocation8 + $0x68] ss:$16 sps:$4 sm:$0xff]  }
 0x443   :  { %1087 = vmatpush1.bf16.msra.mxu0 %v1846_v8  ;;  %1128 = vmatpush1.bf16.msra.mxu1 %v1849_v9  ;;  %v2244_v8 = vld [vmem:[#allocation8 + $0xe4] ss:$16 sps:$4 sm:$0xff]   ;;  %v2247_v9 = vld [vmem:[#allocation8 + $0xec] ss:$16 sps:$4 sm:$0xff]  }
 0x444   :  { %1088 = vmatprep.subr.bf16.mxu0 %v1853_v10  ;;  %1129 = vmatprep.subr.bf16.mxu1 %v1857_v11 }
 0x445   :  { %1118 = vmatprep.mubr.bf16.mxu0 %v2422_v47  ;;  %1159 = vmatprep.mubr.bf16.mxu1 %v2422_v47 }
 0x447   :  { %1089 = vmatpush1.bf16.msra.mxu0 %v1859_v12  ;;  %1130 = vmatpush1.bf16.msra.mxu1 %v1861_v13  ;;  %v2429_v12 = vld [vmem:[#allocation19_spill] sm:$0xff] }
 0x448   :  { %1090 = vmatprep.subr.bf16.mxu0 %v1867_v15  ;;  %1131 = vmatprep.subr.bf16.mxu1 %v1870_v16 }
 0x44b   :  { %1091 = vmatpush1.bf16.msra.mxu0 %v1873_v17  ;;  %1132 = vmatpush1.bf16.msra.mxu1 %v1875_v18  ;;  %v2430_v18 = vld [vmem:[#allocation21_spill] sm:$0xff] }
 0x44c   :  { %1092 = vmatprep.subr.bf16.mxu0 %v1879_v19  ;;  %1133 = vmatprep.subr.bf16.mxu1 %v1882_v20 }
 0x44f   :  { %1093 = vmatpush1.bf16.msra.mxu0 %v1886_v21  ;;  %1134 = vmatpush1.bf16.msra.mxu1 %v1889_v22 }
 0x450   :  { %1094 = vmatprep.subr.bf16.mxu0 %v1894_v23  ;;  %1135 = vmatprep.subr.bf16.mxu1 %v1898_v24 }
 0x453   :  { %1095 = vmatpush1.bf16.msra.mxu0 %v1901_v26  ;;  %1136 = vmatpush1.bf16.msra.mxu1 %v1905_v27 }
 0x454   :  { %1096 = vmatprep.subr.bf16.mxu0 %v1907_v28  ;;  %1137 = vmatprep.subr.bf16.mxu1 %v1910_v29  ;;  %v2431_v28 = vld [vmem:[#allocation22_spill] sm:$0xff] }
 0x457   :  { %1097 = vmatpush1.bf16.msra.mxu0 %v1915_v30  ;;  %1138 = vmatpush1.bf16.msra.mxu1 %v1917_v31  ;;  %v2432_v31 = vld [vmem:[#allocation20_spill] sm:$0xff] }
 0x458   :  { %1098 = vmatprep.subr.bf16.mxu0 %v1922_v32  ;;  %1139 = vmatprep.subr.bf16.mxu1 %v1926_v33 }
 0x45b   :  { %1099 = vmatpush1.bf16.msra.mxu0 %v1929_v35  ;;  %1140 = vmatpush1.bf16.msra.mxu1 %v1933_v36 }
 0x45c   :  { %1100 = vmatprep.subr.bf16.mxu0 %v1935_v37  ;;  %1141 = vmatprep.subr.bf16.mxu1 %v1938_v38 }
 0x45f   :  { %1101 = vmatpush1.bf16.msra.mxu0 %v1943_v39  ;;  %1142 = vmatpush1.bf16.msra.mxu1 %v1948_v40 }
 0x460   :  { %1199 = vmatprep.subr.bf16.mxu0 %v2244_v8  ;;  %1240 = vmatprep.subr.bf16.mxu1 %v2247_v9 }
 0x502   :  { %v1007_v10 = vpop.f32.mrf.mxu0  ;;  %v1048_v11 = vpop.f32.mrf.mxu1 }
 0x503   :  { %v1055_v13 = vadd.f32 %v1007_v10, %v2429_v12  ;;  %v1057_v32 = vadd.f32 %v1048_v11, %v2432_v31  ;;  %v2314_v10 = vld [vmem:[#allocation8 + $0x44] ss:$16 sps:$4 sm:$0xff]   ;;  %v2317_v11 = vld [vmem:[#allocation8 + $0x4c] ss:$16 sps:$4 sm:$0xff]   ;;  %v2320_v12 = vld [vmem:[#allocation8 + $0x40] ss:$16 sps:$4 sm:$0xff]  }
 0x504   :  { %v1009_v15 = vpop.f32.mrf.mxu0  ;;  %v1050_v16 = vpop.f32.mrf.mxu1 }
 0x505   :  { %v1059_v17 = vsub.f32 0.0, %v1055_v13  ;;  %v1056_v19 = vadd.f32 %v1009_v15, %v2430_v18  ;;  %v1058_v29 = vadd.f32 %v1050_v16, %v2431_v28  ;;  %v2323_v13 = vld [vmem:[#allocation8 + $0x48] ss:$16 sps:$4 sm:$0xff]   ;;  %v2326_v15 = vld [vmem:[#allocation8 + $0x24] ss:$16 sps:$4 sm:$0xff]  }
 0x506   :  { %v1011_v20 = vpop.f32.mrf.mxu0  ;;  %v1052_v21 = vpop.f32.mrf.mxu1  ;;  %v2329_v16 = vld [vmem:[#allocation8 + $0x2c] ss:$16 sps:$4 sm:$0xff]   ;;  %v2335_v18 = vld [vmem:[#allocation8 + $0x28] ss:$16 sps:$4 sm:$0xff]  }
 0x507   :  { %v1060_v22 = vmul.f32 1.442695, %v1059_v17  ;;  %v1064_v23 = vsub.f32 0.0, %v1056_v19  ;;  %v1070_v30 = vsub.f32 0.0, %v1058_v29  ;;  %v2332_v17 = vld [vmem:[#allocation8 + $0x20] ss:$16 sps:$4 sm:$0xff]  }
 0x508   :  { %v1012_v24 = vpop.f32.mrf.mxu0  ;;  %v1053_v26 = vpop.f32.mrf.mxu1  ;;  %v2338_v19 = vld [vmem:[#allocation8 + $0x4] ss:$16 sps:$4 sm:$0xff]   ;;  %v2434_v28 = vld [vmem:[#allocation25_spill] sm:$0xff] }
 0x509   :  { %1615 = vpow2.f32 %v1060_v22  ;;  %v1065_v27 = vmul.f32 1.442695, %v1064_v23  ;;  %v1071_v33 = vmul.f32 1.442695, %v1070_v30  ;;  %v2433_v22 = vld [vmem:[#allocation23_spill] sm:$0xff] }
 0x50b   :  { %1617 = vpow2.f32 %v1065_v27 }
 0x50c   :  { %1619 = vtanh.f32 %v1057_v32 }
 0x50d   :  { %1621 = vpow2.f32 %v1071_v33 }
 0x516   :  { %v1616_v35 = vpop.eup %1615 }
 0x517   :  { %v1062_v36 = vadd.f32 1.0, %v1616_v35 }
 0x518   :  { %v1618_v37 = vpop.eup %1617 }
 0x519   :  { %1623 = vrcp.f32 %v1062_v36  ;;  %v1067_v34 = vadd.f32 1.0, %v1618_v37  ;;  %v1620_v49 = vpop.eup %1619  ;;  %v2436_v36 = vld [vmem:[#allocation24_spill] sm:$0xff] }
 0x51a   :  { %v1622_v44 = vpop.eup %1621 }
 0x51b   :  { %1625 = vrcp.f32 %v1067_v34  ;;  %v1073_v51 = vadd.f32 1.0, %v1622_v44 }
 0x51d   :  { %1627 = vrcp.f32 %v1073_v51 }
 0x526   :  { %v1624_v53 = vpop.eup %1623 }
 0x527   :  { %v1076_v1 = vmul.f32 %v1624_v53, %v1620_v49 }
 0x528   :  { %v1626_v3 = vpop.eup %1625 }
 0x529   :  { %v1075_v14 = vmul.f32 %v1626_v3, %v2209_v56  ;;  %v2299_v56 = vld [vmem:[#allocation8 + $0x88] ss:$16 sps:$4 sm:$0xff]  }
 0x52a   :  { %v1628_v6 = vpop.eup %1627 }
 0x52b   :  { %v2255_v63 = vadd.f32 %v1076_v1, %v1075_v14 }
 0x52d   :  { %1629 = vtanh.f32 %v2255_v63 }
 0x53a   :  { %v1630_v7 = vpop.eup %1629 }
 0x53b   :  { %v1079_v25 = vmul.f32 %v1630_v7, %v1628_v6 }
 0x53d   :  { %v1085_v59 = vpack.c.bf16 %v1079_v25, %v1079_v25 }
 0x53f   :  { %1119 = vmatmul.mubr.bf16.vlgmr.msra.gmra.mxu0 %v1085_v59  ;;  %1160 = vmatmul.mubr.bf16.vlgmr.msra.gmra.mxu1 %v1085_v59 }
 0x540   :  { %1200 = vmatpush1.bf16.msra.mxu0 %v2258_v60  ;;  %1241 = vmatpush1.bf16.msra.mxu1 %v2261_v55 }
 0x541   :  { %1201 = vmatprep.subr.bf16.mxu0 %v2264_v45  ;;  %1242 = vmatprep.subr.bf16.mxu1 %v2267_v46 }
 0x542   :  { %1231 = vmatprep.mubr.bf16.mxu0 %v2422_v47  ;;  %1272 = vmatprep.mubr.bf16.mxu1 %v2422_v47 }
 0x544   :  { %1202 = vmatpush1.bf16.msra.mxu0 %v2272_v42  ;;  %1243 = vmatpush1.bf16.msra.mxu1 %v2275_v4 }
 0x545   :  { %1203 = vmatprep.subr.bf16.mxu0 %v2278_v41  ;;  %1244 = vmatprep.subr.bf16.mxu1 %v2281_v43 }
 0x548   :  { %1204 = vmatpush1.bf16.msra.mxu0 %v2284_v61  ;;  %1245 = vmatpush1.bf16.msra.mxu1 %v2287_v52 }
 0x549   :  { %1205 = vmatprep.subr.bf16.mxu0 %v2290_v57  ;;  %1246 = vmatprep.subr.bf16.mxu1 %v2293_v50 }
 0x54c   :  { %1206 = vmatpush1.bf16.msra.mxu0 %v2296_v58  ;;  %1247 = vmatpush1.bf16.msra.mxu1 %v2299_v56 }
 0x54d   :  { %1207 = vmatprep.subr.bf16.mxu0 %v2302_v54  ;;  %1248 = vmatprep.subr.bf16.mxu1 %v2305_v0 }
 0x550   :  { %1208 = vmatpush1.bf16.msra.mxu0 %v2308_v48  ;;  %1249 = vmatpush1.bf16.msra.mxu1 %v2311_v62 }
 0x551   :  { %1209 = vmatprep.subr.bf16.mxu0 %v2314_v10  ;;  %1250 = vmatprep.subr.bf16.mxu1 %v2317_v11 }
 0x554   :  { %1210 = vmatpush1.bf16.msra.mxu0 %v2320_v12  ;;  %1251 = vmatpush1.bf16.msra.mxu1 %v2323_v13 }
 0x555   :  { %1211 = vmatprep.subr.bf16.mxu0 %v2326_v15  ;;  %1252 = vmatprep.subr.bf16.mxu1 %v2329_v16 }
 0x558   :  { %1212 = vmatpush1.bf16.msra.mxu0 %v2332_v17  ;;  %1253 = vmatpush1.bf16.msra.mxu1 %v2335_v18 }
 0x559   :  { %1213 = vmatprep.subr.bf16.mxu0 %v2338_v19  ;;  %1254 = vmatprep.subr.bf16.mxu1 %v1938_v38 }
 0x55c   :  { %1214 = vmatpush1.bf16.msra.mxu0 %v1943_v39  ;;  %1255 = vmatpush1.bf16.msra.mxu1 %v1948_v40 }
 0x55d   :  { %1312 = vmatprep.subr.bf16.mxu0 %v2244_v8  ;;  %1353 = vmatprep.subr.bf16.mxu1 %v2247_v9  ;;  %v2435_v8 = vld [vmem:[#allocation26_spill] sm:$0xff] }
 0x5ff   :  { %v1120_v20 = vpop.f32.mrf.mxu0  ;;  %v1161_v21 = vpop.f32.mrf.mxu1 }
 0x600   :  { %v1168_v23 = vadd.f32 %v1120_v20, %v2433_v22  ;;  %v1170_v37 = vadd.f32 %v1161_v21, %v2436_v36  ;;  %v2441_v36 = vld [vmem:[#allocation31_spill] sm:$0xff] }
 0x601   :  { %v1122_v24 = vpop.f32.mrf.mxu0  ;;  %v1163_v26 = vpop.f32.mrf.mxu1 }
 0x602   :  { %v1172_v27 = vsub.f32 0.0, %v1168_v23  ;;  %v1169_v29 = vadd.f32 %v1122_v24, %v2434_v28  ;;  %v1171_v9 = vadd.f32 %v1163_v26, %v2435_v8 }
 0x603   :  { %v1124_v30 = vpop.f32.mrf.mxu0  ;;  %v1165_v31 = vpop.f32.mrf.mxu1 }
 0x604   :  { %v1173_v38 = vmul.f32 1.442695, %v1172_v27  ;;  %v1177_v32 = vsub.f32 0.0, %v1169_v29  ;;  %v1183_v35 = vsub.f32 0.0, %v1171_v9 }
 0x605   :  { %v1125_v39 = vpop.f32.mrf.mxu0  ;;  %v1166_v33 = vpop.f32.mrf.mxu1 }
 0x606   :  { %1631 = vpow2.f32 %v1173_v38  ;;  %v1178_v40 = vmul.f32 1.442695, %v1177_v32  ;;  %v1184_v34 = vmul.f32 1.442695, %v1183_v35 }
 0x608   :  { %1633 = vpow2.f32 %v1178_v40 }
 0x609   :  { %1635 = vtanh.f32 %v1170_v37 }
 0x60a   :  { %1637 = vpow2.f32 %v1184_v34 }
 0x613   :  { %v1632_v49 = vpop.eup %1631 }
 0x614   :  { %v1175_v44 = vadd.f32 1.0, %v1632_v49 }
 0x615   :  { %v1634_v53 = vpop.eup %1633 }
 0x616   :  { %1639 = vrcp.f32 %v1175_v44  ;;  %v1180_v1 = vadd.f32 1.0, %v1634_v53  ;;  %v1636_v3 = vpop.eup %1635 }
 0x617   :  { %v1638_v51 = vpop.eup %1637 }
 0x618   :  { %1641 = vrcp.f32 %v1180_v1  ;;  %v1186_v25 = vadd.f32 1.0, %v1638_v51 }
 0x61a   :  { %1643 = vrcp.f32 %v1186_v25 }
 0x623   :  { %v1640_v14 = vpop.eup %1639 }
 0x624   :  { %v1189_v6 = vmul.f32 %v1640_v14, %v1636_v3 }
 0x625   :  { %v1642_v7 = vpop.eup %1641 }
 0x626   :  { %v1188_v59 = vmul.f32 %v1642_v7, %v2255_v63  ;;  %v1709_v63 = vld [vmem:[#allocation8] ss:$16 sps:$4 sm:$0xff]  }
 0x627   :  { %v1644_v21 = vpop.eup %1643 }
 0x628   :  { %v2351_v20 = vadd.f32 %v1189_v6, %v1188_v59 }
 0x62a   :  { %1645 = vtanh.f32 %v2351_v20 }
 0x637   :  { %v1646_v22 = vpop.eup %1645 }
 0x638   :  { %v1192_v23 = vmul.f32 %v1646_v22, %v1644_v21  ;;  %v2442_v21 = vld [vmem:[#allocation32_spill] sm:$0xff] }
 0x63a   :  { %v1198_v24 = vpack.c.bf16 %v1192_v23, %v1192_v23 }
 0x63c   :  { %1232 = vmatmul.mubr.bf16.vlgmr.msra.gmra.mxu0 %v1198_v24  ;;  %1273 = vmatmul.mubr.bf16.vlgmr.msra.gmra.mxu1 %v1198_v24 }
 0x63d   :  { %1313 = vmatpush1.bf16.msra.mxu0 %v2258_v60  ;;  %1354 = vmatpush1.bf16.msra.mxu1 %v2261_v55  ;;  %v1710_v60 = vld [vmem:[#allocation8 + $0x8] ss:$16 sps:$4 sm:$0xff]  }
 0x63e   :  { %1314 = vmatprep.subr.bf16.mxu0 %v2264_v45  ;;  %1355 = vmatprep.subr.bf16.mxu1 %v2267_v46  ;;  %v2437_v46 = vld [vmem:[#allocation27_spill] sm:$0xff] }
 0x63f   :  { %1344 = vmatprep.mubr.bf16.mxu0 %v2422_v47  ;;  %1385 = vmatprep.mubr.bf16.mxu1 %v2422_v47  ;;  %v1708_v47 = vld [vmem:[#allocation8 + $0xc] ss:$16 sps:$4 sm:$0xff]  }
 0x641   :  { %1315 = vmatpush1.bf16.msra.mxu0 %v2272_v42  ;;  %1356 = vmatpush1.bf16.msra.mxu1 %v2275_v4 }
 0x642   :  { %1316 = vmatprep.subr.bf16.mxu0 %v2278_v41  ;;  %1357 = vmatprep.subr.bf16.mxu1 %v2281_v43 }
 0x645   :  { %1317 = vmatpush1.bf16.msra.mxu0 %v2284_v61  ;;  %1358 = vmatpush1.bf16.msra.mxu1 %v2287_v52  ;;  %v2438_v61 = vld [vmem:[#allocation29_spill] sm:$0xff] }
 0x646   :  { %1318 = vmatprep.subr.bf16.mxu0 %v2290_v57  ;;  %1359 = vmatprep.subr.bf16.mxu1 %v2293_v50 }
 0x649   :  { %1319 = vmatpush1.bf16.msra.mxu0 %v2296_v58  ;;  %1360 = vmatpush1.bf16.msra.mxu1 %v2299_v56 }
 0x64a   :  { %1320 = vmatprep.subr.bf16.mxu0 %v2302_v54  ;;  %1361 = vmatprep.subr.bf16.mxu1 %v2305_v0 }
 0x64d   :  { %1321 = vmatpush1.bf16.msra.mxu0 %v2308_v48  ;;  %1362 = vmatpush1.bf16.msra.mxu1 %v2311_v62  ;;  %v2439_v62 = vld [vmem:[#allocation30_spill] sm:$0xff] }
 0x64e   :  { %1322 = vmatprep.subr.bf16.mxu0 %v2314_v10  ;;  %1363 = vmatprep.subr.bf16.mxu1 %v2317_v11 }
 0x651   :  { %1323 = vmatpush1.bf16.msra.mxu0 %v2320_v12  ;;  %1364 = vmatpush1.bf16.msra.mxu1 %v2323_v13  ;;  %v2440_v12 = vld [vmem:[#allocation28_spill] sm:$0xff] }
 0x652   :  { %1324 = vmatprep.subr.bf16.mxu0 %v2326_v15  ;;  %1365 = vmatprep.subr.bf16.mxu1 %v2329_v16 }
 0x655   :  { %1325 = vmatpush1.bf16.msra.mxu0 %v2332_v17  ;;  %1366 = vmatpush1.bf16.msra.mxu1 %v2335_v18 }
 0x656   :  { %1326 = vmatprep.subr.bf16.mxu0 %v2338_v19  ;;  %1367 = vmatprep.subr.bf16.mxu1 %v1708_v47 }
 0x659   :  { %1327 = vmatpush1.bf16.msra.mxu0 %v1709_v63  ;;  %1368 = vmatpush1.bf16.msra.mxu1 %v1710_v60 }
 0x6fc   :  { %v1233_v55 = vpop.f32.mrf.mxu0  ;;  %v1274_v45 = vpop.f32.mrf.mxu1 }
 0x6fd   :  { %v1281_v42 = vadd.f32 %v1233_v55, %v2437_v46  ;;  %v1283_v13 = vadd.f32 %v1274_v45, %v2440_v12 }
 0x6fe   :  { %v1235_v4 = vpop.f32.mrf.mxu0  ;;  %v1276_v41 = vpop.f32.mrf.mxu1 }
 0x6ff   :  { %v1285_v43 = vsub.f32 0.0, %v1281_v42  ;;  %v1282_v52 = vadd.f32 %v1235_v4, %v2438_v61  ;;  %v1284_v10 = vadd.f32 %v1276_v41, %v2439_v62 }
 0x700   :  { %v1237_v57 = vpop.f32.mrf.mxu0  ;;  %v1278_v50 = vpop.f32.mrf.mxu1 }
 0x701   :  { %v1286_v58 = vmul.f32 1.442695, %v1285_v43  ;;  %v1290_v56 = vsub.f32 0.0, %v1282_v52  ;;  %v1296_v11 = vsub.f32 0.0, %v1284_v10 }
 0x702   :  { %v1238_v54 = vpop.f32.mrf.mxu0  ;;  %v1279_v0 = vpop.f32.mrf.mxu1 }
 0x703   :  { %1647 = vpow2.f32 %v1286_v58  ;;  %v1291_v48 = vmul.f32 1.442695, %v1290_v56  ;;  %v1297_v15 = vmul.f32 1.442695, %v1296_v11 }
 0x705   :  { %1649 = vpow2.f32 %v1291_v48 }
 0x706   :  { %1651 = vtanh.f32 %v1283_v13 }
 0x707   :  { %1653 = vpow2.f32 %v1297_v15 }
 0x710   :  { %v1648_v16 = vpop.eup %1647 }
 0x711   :  { %v1288_v17 = vadd.f32 1.0, %v1648_v16 }
 0x712   :  { %v1650_v18 = vpop.eup %1649 }
 0x713   :  { %1655 = vrcp.f32 %v1288_v17  ;;  %v1293_v19 = vadd.f32 1.0, %v1650_v18  ;;  %v1652_v26 = vpop.eup %1651 }
 0x714   :  { %v1654_v27 = vpop.eup %1653 }
 0x715   :  { %1657 = vrcp.f32 %v1293_v19  ;;  %v1299_v31 = vadd.f32 1.0, %v1654_v27 }
 0x717   :  { %1659 = vrcp.f32 %v1299_v31 }
 0x720   :  { %v1656_v28 = vpop.eup %1655 }
 0x721   :  { %v1302_v29 = vmul.f32 %v1656_v28, %v1652_v26 }
 0x722   :  { %v1658_v30 = vpop.eup %1657 }
 0x723   :  { %v1301_v38 = vmul.f32 %v1658_v30, %v2351_v20 }
 0x724   :  { %v1660_v39 = vpop.eup %1659 }
 0x725   :  { %v1303_v32 = vadd.f32 %v1302_v29, %v1301_v38 }
 0x727   :  { %1661 = vtanh.f32 %v1303_v32 }
 0x734   :  { %v1662_v33 = vpop.eup %1661 }
 0x735   :  { %v1305_v40 = vmul.f32 %v1662_v33, %v1660_v39 }
 0x737   :  { %v1311_v8 = vpack.c.bf16 %v1305_v40, %v1305_v40 }
 0x739   :  { %1345 = vmatmul.mubr.bf16.vlgmr.msra.gmra.mxu0 %v1311_v8  ;;  %1386 = vmatmul.mubr.bf16.vlgmr.msra.gmra.mxu1 %v1311_v8 }
 0x7f9   :  { %v1346_v9 = vpop.f32.mrf.mxu0  ;;  %v1387_v35 = vpop.f32.mrf.mxu1 }
 0x7fa   :  { %v1394_v37 = vadd.f32 %v1346_v9, %v2441_v36  ;;  %v1396_v22 = vadd.f32 %v1387_v35, %v2442_v21 }
 0x7fb   :  { %v1348_v34 = vpop.f32.mrf.mxu0  ;;  %v1389_v49 = vpop.f32.mrf.mxu1 }
 0x7fc   :  { %v1398_v44 = vsub.f32 0.0, %v1394_v37  ;;  %v1395_v53 = vadd.f32 %v1348_v34, %v2073_v2  ;;  %v1397_v59 = vadd.f32 %v1389_v49, %v2076_v5 }
 0x7fd   :  { %v1350_v1 = vpop.f32.mrf.mxu0  ;;  %v1391_v3 = vpop.f32.mrf.mxu1 }
 0x7fe   :  { %v1399_v51 = vmul.f32 1.442695, %v1398_v44  ;;  %v1403_v14 = vsub.f32 0.0, %v1395_v53  ;;  %v1409_v20 = vsub.f32 0.0, %v1397_v59 }
 0x7ff   :  { %v1351_v6 = vpop.f32.mrf.mxu0  ;;  %v1392_v7 = vpop.f32.mrf.mxu1 }
 0x800   :  { %1663 = vpow2.f32 %v1399_v51  ;;  %v1404_v25 = vmul.f32 1.442695, %v1403_v14  ;;  %v1410_v23 = vmul.f32 1.442695, %v1409_v20 }
 0x802   :  { %1665 = vpow2.f32 %v1404_v25 }
 0x803   :  { %1667 = vtanh.f32 %v1396_v22 }
 0x804   :  { %1669 = vpow2.f32 %v1410_v23 }
 0x80d   :  { %v1664_v24 = vpop.eup %1663 }
 0x80e   :  { %v1401_v47 = vadd.f32 1.0, %v1664_v24 }
 0x80f   :  { %v1666_v63 = vpop.eup %1665 }
 0x810   :  { %1671 = vrcp.f32 %v1401_v47  ;;  %v1406_v2 = vadd.f32 1.0, %v1666_v63  ;;  %v1668_v60 = vpop.eup %1667 }
 0x811   :  { %v1670_v55 = vpop.eup %1669 }
 0x812   :  { %1673 = vrcp.f32 %v1406_v2  ;;  %v1412_v4 = vadd.f32 1.0, %v1670_v55 }
 0x814   :  { %1675 = vrcp.f32 %v1412_v4 }
 0x81d   :  { %v1672_v45 = vpop.eup %1671 }
 0x81e   :  { %v1415_v46 = vmul.f32 %v1672_v45, %v1668_v60 }
 0x81f   :  { %v1674_v42 = vpop.eup %1673 }
 0x820   :  { %v1414_v41 = vmul.f32 %v1674_v42, %v1303_v32 }
 0x821   :  { %v1676_v43 = vpop.eup %1675 }
 0x822   :  { %v1416_v5 = vadd.f32 %v1415_v46, %v1414_v41 }
 0x824   :  { %1677 = vtanh.f32 %v1416_v5 }
 0x831   :  { %v1678_v61 = vpop.eup %1677 }
 0x832   :  { %v1418_v52 = vmul.f32 %v1678_v61, %v1676_v43 }
 0x834   :  { %1419 = vst [vmem:[#allocation9] sm:$0xff] %v1418_v52 }
 0x835   :  { %1782 = shalt.err (!%p1779_p5)
}
 0x836   :  { %1429 = dma.vmem_to_hbm [thread:$0]  %s1427_s7, 128, %s2399_s4, [#allocation5]  }
 0x837   :  { %1795 = dma.done.wait [#allocation5], 128  }
 0x838   :  { %1796 = vsyncadd [#allocation5], 4294967168 }
 0x839   :  { %1433 = vsyncpa [#allocation4], 1 }
 0x83a   :  { %1434 = vsyncpa [#allocation7], 1 }
 0x83b   :  { %1435 = vsyncpa [#allocation5], 1 }

</bundles_post_ra>
